<compile_context>
chip_gen: v7x
topology: tpu7x:2x2x1
jax: 0.10.0
libtpu: 0.0.40
codegen_flags: <defaults>
</compile_context>

<pallas_src>
import functools

import jax
import jax.numpy as jnp
from jax import lax
from jax.experimental import pallas as pl
from jax.experimental.pallas import tpu as pltpu


# ----------------------------------------------------------------------------
# Pallas kernel: fused 3x3 conv (pad=1, no bias) + BatchNorm(eval) + ReLU.
# Handles 1..K input tensors (channel-concatenated logically, never in HBM).
# ----------------------------------------------------------------------------
def _conv3x3_bn_relu_kernel(num_inputs, *refs):
    # refs: for each input i -> (center (1,th,W,Ci), prev_row (1,1,W,Ci),
    #                            next_row (1,1,W,Ci));
    # then w (9*Cin_tot, Cout), scale (1,Cout) f32, shift (1,Cout) f32,
    # then o (1, th, W, Cout).
    in_refs = refs[:3 * num_inputs]
    w_ref, scale_ref, shift_ref, o_ref = refs[3 * num_inputs:]
    _, th, W, cout = o_ref.shape

    r = pl.program_id(1)
    last_r = pl.num_programs(1) - 1
    cdt = in_refs[0].dtype
    # Halo rows come from the neighbouring row tiles; at the image border they
    # are zeroed (this realizes the conv's padding=1 in H).
    top_m = jnp.where(r > 0, 1.0, 0.0).astype(cdt)
    bot_m = jnp.where(r < last_r, 1.0, 0.0).astype(cdt)

    tops, mids, bots = [], [], []
    for i in range(num_inputs):
        c_ref, p_ref, n_ref = in_refs[3 * i:3 * i + 3]
        mids.append(c_ref[0])             # (th, W, Ci)
        tops.append(p_ref[0] * top_m)     # (1,  W, Ci)
        bots.append(n_ref[0] * bot_m)     # (1,  W, Ci)

    def cat_c(parts):
        return parts[0] if len(parts) == 1 else jnp.concatenate(parts, axis=-1)

    top, mid, bot = cat_c(tops), cat_c(mids), cat_c(bots)
    cin_total = mid.shape[-1]

    # Assemble the zero-padded window in VMEM (rows: halo, cols: zeros).
    win = jnp.concatenate([top, mid, bot], axis=0)            # (th+2, W,   Cin)
    zcol = jnp.zeros((th + 2, 1, cin_total), cdt)
    win = jnp.concatenate([zcol, win, zcol], axis=1)          # (th+2, W+2, Cin)

    # im2col: 9 shifted taps concatenated along the lane/channel axis ->
    # one big-K MXU matmul instead of 9 small-K ones.
    taps = [win[dy:dy + th, dx:dx + W, :] for dy in range(3) for dx in range(3)]
    patch = jnp.concatenate(taps, axis=-1).reshape(th * W, 9 * cin_total)

    acc = jnp.dot(patch, w_ref[...], preferred_element_type=jnp.float32)
    y = jnp.maximum(acc * scale_ref[0] + shift_ref[0], 0.0)   # BN + ReLU in f32
    o_ref[0] = y.reshape(th, W, cout).astype(o_ref.dtype)


# ----------------------------------------------------------------------------
# VMEM budgeting / tile selection
# ----------------------------------------------------------------------------
def _stage_vmem_bytes(th, W, cin_total, cout, in_bytes, out_bytes):
    # Auto-pipelined blocks are double buffered.
    act_blocks = 2 * ((th + 2) * W * cin_total * in_bytes
                      + th * W * cout * out_bytes)
    weight_blocks = 2 * (9 * cin_total * cout * in_bytes + 2 * cout * 4)
    # In-kernel temporaries: padded window, im2col patch (bf16), f32 acc + BN.
    temporaries = ((th + 2) * (W + 2) * cin_total * in_bytes
                   + th * W * 9 * cin_total * in_bytes
                   + 2 * th * W * cout * 4)
    return act_blocks + weight_blocks + temporaries


def _pick_tile_h(H, W, cin_total, cout, in_bytes, out_bytes,
                 budget_bytes=16 * 1024 * 1024):
    # Largest divisor of H whose working set fits a conservative per-stage
    # VMEM budget (safe on v7x's 64 MiB; v5e/v6e simply get larger tiles).
    # TODO(synk): support tile heights that do not divide H (pad/peel remainder).
    for th in range(H, 0, -1):
        if H % th == 0 and _stage_vmem_bytes(
                th, W, cin_total, cout, in_bytes, out_bytes) <= budget_bytes:
            return th
    return 1


# ----------------------------------------------------------------------------
# One conv+BN+ReLU stage: pallas_call wiring (row tiling + halo blocks)
# ----------------------------------------------------------------------------
def _conv3x3_bn_relu_stage(inputs_nhwc, w_flat, bn_scale, bn_shift, *,
                           out_dtype, tile_h=None):
    """inputs_nhwc: list of (N,H,W,Ci) bf16 arrays (logically channel-concat'd,
    in order); w_flat: (9*sum(Ci), Cout) bf16; bn_*: (Cout,) f32."""
    N, H, W, _ = inputs_nhwc[0].shape
    cin_total = sum(int(x.shape[-1]) for x in inputs_nhwc)
    cout = int(w_flat.shape[-1])
    assert int(w_flat.shape[0]) == 9 * cin_total

    in_bytes = jnp.dtype(inputs_nhwc[0].dtype).itemsize
    out_bytes = jnp.dtype(out_dtype).itemsize
    if tile_h is None:
        tile_h = _pick_tile_h(H, W, cin_total, cout, in_bytes, out_bytes)
    assert H % tile_h == 0, "tile_h must divide H"
    th = tile_h
    num_row_tiles = H // th

    scale2 = jnp.asarray(bn_scale, jnp.float32).reshape(1, cout)
    shift2 = jnp.asarray(bn_shift, jnp.float32).reshape(1, cout)

    in_specs = []
    operands = []
    for x in inputs_nhwc:
        C = int(x.shape[-1])
        # center rows of this tile
        in_specs.append(pl.BlockSpec((1, th, W, C), lambda n, r: (n, r, 0, 0)))
        # 1-row halo blocks: block size 1 along H, so the block index IS the
        # (clamped) row index of the neighbouring tile's edge row.
        in_specs.append(pl.BlockSpec(
            (1, 1, W, C), lambda n, r: (n, jnp.maximum(r * th - 1, 0), 0, 0)))
        in_specs.append(pl.BlockSpec(
            (1, 1, W, C), lambda n, r: (n, jnp.minimum(r * th + th, H - 1), 0, 0)))
        operands += [x, x, x]

    # Grid-invariant params: constant block index -> fetched once by the pipeline.
    # TODO(synk): single-buffer these blocks to save VMEM at large Cin/Cout.
    in_specs += [
        pl.BlockSpec((9 * cin_total, cout), lambda n, r: (0, 0)),
        pl.BlockSpec((1, cout), lambda n, r: (0, 0)),
        pl.BlockSpec((1, cout), lambda n, r: (0, 0)),
    ]
    operands += [w_flat, scale2, shift2]

    est = _stage_vmem_bytes(th, W, cin_total, cout, in_bytes, out_bytes)
    vmem_limit = int(min(56 * 1024 * 1024, max(32 * 1024 * 1024, 2 * est)))

    kernel = functools.partial(_conv3x3_bn_relu_kernel, len(inputs_nhwc))

    return pl.pallas_call(
        kernel,
        out_shape=jax.ShapeDtypeStruct((N, H, W, cout), out_dtype),
        grid_spec=pltpu.PrefetchScalarGridSpec(
            num_scalar_prefetch=0,
            grid=(N, num_row_tiles),
            in_specs=in_specs,
            out_specs=pl.BlockSpec((1, th, W, cout), lambda n, r: (n, r, 0, 0)),
        ),
        compiler_params=pltpu.CompilerParams(
            dimension_semantics=("parallel", "parallel"),
            vmem_limit_bytes=vmem_limit,
        ),
    )(*operands)


# ----------------------------------------------------------------------------
# Plain-JAX glue: bilinear x2 upsample (PyTorch align_corners=False semantics)
# ----------------------------------------------------------------------------
def bilinear_upsample(x_nhwc, scale_factor):
    N, H, W, C = x_nhwc.shape
    Ho, Wo = H * scale_factor, W * scale_factor

    def src_idx(out_size, in_size, s):
        src = (jnp.arange(out_size, dtype=jnp.float32) + 0.5) / s - 0.5
        src = jnp.maximum(src, 0.0)  # PyTorch clamps the source coord at 0
        i0 = jnp.minimum(jnp.floor(src).astype(jnp.int32), in_size - 1)
        i1 = jnp.minimum(i0 + 1, in_size - 1)
        lam = src - i0.astype(jnp.float32)
        return i0, i1, lam

    h0, h1, lh = src_idx(Ho, H, scale_factor)
    w0, w1, lw = src_idx(Wo, W, scale_factor)

    top = x_nhwc[:, h0]
    bot = x_nhwc[:, h1]

    def interp_w(v):
        return (v[:, :, w0] * (1.0 - lw)[None, None, :, None]
                + v[:, :, w1] * lw[None, None, :, None])

    top_i = interp_w(top)
    bot_i = interp_w(bot)
    return top_i * (1.0 - lh)[None, :, None, None] + bot_i * lh[None, :, None, None]


# ----------------------------------------------------------------------------
# Module: UpsamplingConcat forward
# ----------------------------------------------------------------------------
def upsampling_concat_forward(x_to_upsample_nchw, x_nchw, params,
                              scale_factor=2, tile_h=None):
    # TODO(synk): keep the surrounding model NHWC end-to-end to drop these
    # boundary transposes (each is a full-tensor HBM pass in XLA).
    xu = jnp.transpose(x_to_upsample_nchw, (0, 2, 3, 1)).astype(jnp.float32)
    xc = jnp.transpose(x_nchw, (0, 2, 3, 1)).astype(jnp.float32)

    # TODO(synk): fold the fixed-weight x2 bilinear upsample (0.25/0.75 stencil)
    # into the first conv kernel instead of this XLA gather+lerp pass.
    xu = bilinear_upsample(xu, scale_factor)

    diffY = xc.shape[1] - xu.shape[1]
    diffX = xc.shape[2] - xu.shape[2]
    if diffY or diffX:
        xu = jnp.pad(
            xu,
            ((0, 0),
             (diffY // 2, diffY - diffY // 2),
             (diffX // 2, diffX - diffX // 2),
             (0, 0)))

    xc16 = xc.astype(jnp.bfloat16)
    xu16 = xu.astype(jnp.bfloat16)

    cin1 = xc16.shape[-1] + xu16.shape[-1]
    cout = int(params["w1"].shape[-1])
    w1_flat = params["w1"].reshape(9 * cin1, cout).astype(jnp.bfloat16)
    w2_flat = params["w2"].reshape(9 * cout, cout).astype(jnp.bfloat16)

    # torch.cat([x, x_to_upsample], dim=1): x's channels come first, so xc is
    # passed first — the concat happens inside the kernel, never in HBM.
    y = _conv3x3_bn_relu_stage([xc16, xu16], w1_flat,
                               params["bn1_scale"], params["bn1_shift"],
                               out_dtype=jnp.bfloat16, tile_h=tile_h)
    y = _conv3x3_bn_relu_stage([y], w2_flat,
                               params["bn2_scale"], params["bn2_shift"],
                               out_dtype=jnp.float32, tile_h=tile_h)

    return jnp.transpose(y, (0, 3, 1, 2))


# ----------------------------------------------------------------------------
# Deterministic parameter init + reference check
# ----------------------------------------------------------------------------
def make_params(key, in_channels, out_channels):
    ks = jax.random.split(key, 8)
    eps = 1e-5

    def bn_affine(kg, kb, km, kv, c):
        gamma = 1.0 + 0.1 * jax.random.normal(kg, (c,), jnp.float32)
        beta = 0.1 * jax.random.normal(kb, (c,), jnp.float32)
        mean = 0.1 * jax.random.normal(km, (c,), jnp.float32)
        var = jnp.abs(1.0 + 0.1 * jax.random.normal(kv, (c,), jnp.float32))
        scale = gamma / jnp.sqrt(var + eps)
        shift = beta - mean * scale
        return scale, shift

    # Conv weights stored as HWIO (3, 3, Cin, Cout); PyTorch's (Cout, Cin, 3, 3)
    # would be transposed (2, 3, 1, 0) to get this layout. The input-channel
    # axis is ordered [x channels, x_to_upsample channels] (torch.cat order).
    w1 = 0.1 * jax.random.normal(ks[0], (3, 3, in_channels, out_channels), jnp.float32)
    w2 = 0.1 * jax.random.normal(ks[1], (3, 3, out_channels, out_channels), jnp.float32)
    bn1_scale, bn1_shift = bn_affine(ks[2], ks[3], ks[4], ks[5], out_channels)
    bn2_scale, bn2_shift = bn_affine(ks[6], ks[7], ks[2], ks[3], out_channels)
    return {
        "w1": w1, "bn1_scale": bn1_scale, "bn1_shift": bn1_shift,
        "w2": w2, "bn2_scale": bn2_scale, "bn2_shift": bn2_shift,
    }


def _ref_conv3x3_bn_relu(x_nhwc, w_hwio, scale, shift):
    # Mirror the kernel's numerics: bf16 operands, f32 accumulation.
    y = lax.conv_general_dilated(
        x_nhwc.astype(jnp.bfloat16), w_hwio.astype(jnp.bfloat16),
        window_strides=(1, 1), padding="SAME",
        dimension_numbers=("NHWC", "HWIO", "NHWC"),
        preferred_element_type=jnp.float32)
    return jnp.maximum(y * scale[None, None, None, :] + shift[None, None, None, :], 0.0)


def _ref_forward(x_to_upsample_nchw, x_nchw, params, scale_factor=2):
    xu = jnp.transpose(x_to_upsample_nchw, (0, 2, 3, 1)).astype(jnp.float32)
    xc = jnp.transpose(x_nchw, (0, 2, 3, 1)).astype(jnp.float32)
    xu = bilinear_upsample(xu, scale_factor)
    diffY = xc.shape[1] - xu.shape[1]
    diffX = xc.shape[2] - xu.shape[2]
    if diffY or diffX:
        xu = jnp.pad(xu, ((0, 0), (diffY // 2, diffY - diffY // 2),
                          (diffX // 2, diffX - diffX // 2), (0, 0)))
    cat = jnp.concatenate([xc, xu], axis=-1)
    y = _ref_conv3x3_bn_relu(cat, params["w1"], params["bn1_scale"], params["bn1_shift"])
    y = y.astype(jnp.bfloat16)  # mirror the Pallas stage-1 bf16 output
    y = _ref_conv3x3_bn_relu(y, params["w2"], params["bn2_scale"], params["bn2_shift"])
    return jnp.transpose(y, (0, 3, 1, 2))


if __name__ == "__main__":
    key = jax.random.PRNGKey(0)
    k_xu, k_x, k_p = jax.random.split(key, 3)

    # x_to_upsample (2,4,8,8) upsampled x2 -> (2,4,16,16); x (2,4,16,16).
    # Concatenated channels = 8 -> conv in_channels=8, out_channels=8.
    B, C_up, C_skip = 2, 4, 4
    H, W = 16, 16
    in_channels = C_up + C_skip
    out_channels = 8

    x_to_upsample = jax.random.normal(k_xu, (B, C_up, H // 2, W // 2), jnp.float32)
    x = jax.random.normal(k_x, (B, C_skip, H, W), jnp.float32)
    params = make_params(k_p, in_channels, out_channels)

    # tile_h=8 exercises the row-tiled + halo path: grid = (2 batches, 2 row tiles).
    fwd = jax.jit(functools.partial(upsampling_concat_forward,
                                    scale_factor=2, tile_h=8))
    out = jax.block_until_ready(fwd(x_to_upsample, x, params))

    ref = _ref_forward(x_to_upsample, x, params)
    assert out.shape == (B, out_channels, H, W), out.shape
    max_err = float(jnp.max(jnp.abs(out - ref)))
    assert jnp.allclose(out, ref, atol=5e-3, rtol=5e-3), max_err

    print("KERNEL_OK")
</pallas_src>

<mosaic_0001>
module attributes {stable_mosaic.version = 11 : i64} {
  func.func @_conv3x3_bn_relu_kernel(%arg0: i32, %arg1: i32, %arg2: memref<1x8x16x4xbf16, #tpu.memory_space<vmem>>, %arg3: memref<1x1x16x4xbf16, #tpu.memory_space<vmem>>, %arg4: memref<1x1x16x4xbf16, #tpu.memory_space<vmem>>, %arg5: memref<1x8x16x4xbf16, #tpu.memory_space<vmem>>, %arg6: memref<1x1x16x4xbf16, #tpu.memory_space<vmem>>, %arg7: memref<1x1x16x4xbf16, #tpu.memory_space<vmem>>, %arg8: memref<72x8xbf16, #tpu.memory_space<vmem>>, %arg9: memref<1x8xf32, #tpu.memory_space<vmem>>, %arg10: memref<1x8xf32, #tpu.memory_space<vmem>>, %arg11: memref<1x8x16x8xbf16, #tpu.memory_space<vmem>>) attributes {dimension_semantics = [#tpu.dimension_semantics<parallel>, #tpu.dimension_semantics<parallel>], iteration_bounds = array<i64: 2, 2>, scalar_prefetch = 0 : i64, scratch_operands = 0 : i64, tpu.core_type = #tpu.core_type<tc>, window_params = [{transform_indices = @transform_0, window_bounds = array<i64: 1, 8, 16, 4>}, {transform_indices = @transform_1, window_bounds = array<i64: 1, 1, 16, 4>}, {transform_indices = @transform_2, window_bounds = array<i64: 1, 1, 16, 4>}, {transform_indices = @transform_3, window_bounds = array<i64: 1, 8, 16, 4>}, {transform_indices = @transform_4, window_bounds = array<i64: 1, 1, 16, 4>}, {transform_indices = @transform_5, window_bounds = array<i64: 1, 1, 16, 4>}, {pipeline_mode = #tpu.pipeline_mode<synchronous>, transform_indices = @transform_6, window_bounds = array<i64: 72, 8>}, {pipeline_mode = #tpu.pipeline_mode<synchronous>, transform_indices = @transform_7, window_bounds = array<i64: 1, 8>}, {pipeline_mode = #tpu.pipeline_mode<synchronous>, transform_indices = @transform_8, window_bounds = array<i64: 1, 8>}, {transform_indices = @transform_9, window_bounds = array<i64: 1, 8, 16, 8>}]} {
    %c0_i32 = arith.constant 0 : i32
    %0 = arith.cmpi sgt, %arg1, %c0_i32 : i32
    %cst = arith.constant 1.000000e+00 : f32
    %cst_0 = arith.constant 0.000000e+00 : f32
    %1 = arith.select %0, %cst, %cst_0 : f32
    %2 = arith.truncf %1 : f32 to bf16
    %c1_i32 = arith.constant 1 : i32
    %3 = arith.cmpi slt, %arg1, %c1_i32 : i32
    %cst_1 = arith.constant 1.000000e+00 : f32
    %cst_2 = arith.constant 0.000000e+00 : f32
    %4 = arith.select %3, %cst_1, %cst_2 : f32
    %5 = arith.truncf %4 : f32 to bf16
    %c0 = arith.constant 0 : index
    %c0_3 = arith.constant 0 : index
    %c0_4 = arith.constant 0 : index
    %c0_5 = arith.constant 0 : index
    %6 = vector.load %arg2[%c0, %c0_3, %c0_4, %c0_5] : memref<1x8x16x4xbf16, #tpu.memory_space<vmem>>, vector<1x8x16x4xbf16>
    %7 = vector.shape_cast %6 : vector<1x8x16x4xbf16> to vector<8x16x4xbf16>
    %c0_6 = arith.constant 0 : index
    %c0_7 = arith.constant 0 : index
    %c0_8 = arith.constant 0 : index
    %c0_9 = arith.constant 0 : index
    %8 = vector.load %arg3[%c0_6, %c0_7, %c0_8, %c0_9] : memref<1x1x16x4xbf16, #tpu.memory_space<vmem>>, vector<1x1x16x4xbf16>
    %9 = vector.shape_cast %8 : vector<1x1x16x4xbf16> to vector<1x16x4xbf16>
    %10 = vector.broadcast %2 : bf16 to vector<1x16x4xbf16>
    %11 = arith.mulf %9, %10 : vector<1x16x4xbf16>
    %c0_10 = arith.constant 0 : index
    %c0_11 = arith.constant 0 : index
    %c0_12 = arith.constant 0 : index
    %c0_13 = arith.constant 0 : index
    %12 = vector.load %arg4[%c0_10, %c0_11, %c0_12, %c0_13] : memref<1x1x16x4xbf16, #tpu.memory_space<vmem>>, vector<1x1x16x4xbf16>
    %13 = vector.shape_cast %12 : vector<1x1x16x4xbf16> to vector<1x16x4xbf16>
    %14 = vector.broadcast %5 : bf16 to vector<1x16x4xbf16>
    %15 = arith.mulf %13, %14 : vector<1x16x4xbf16>
    %c0_14 = arith.constant 0 : index
    %c0_15 = arith.constant 0 : index
    %c0_16 = arith.constant 0 : index
    %c0_17 = arith.constant 0 : index
    %16 = vector.load %arg5[%c0_14, %c0_15, %c0_16, %c0_17] : memref<1x8x16x4xbf16, #tpu.memory_space<vmem>>, vector<1x8x16x4xbf16>
    %17 = vector.shape_cast %16 : vector<1x8x16x4xbf16> to vector<8x16x4xbf16>
    %c0_18 = arith.constant 0 : index
    %c0_19 = arith.constant 0 : index
    %c0_20 = arith.constant 0 : index
    %c0_21 = arith.constant 0 : index
    %18 = vector.load %arg6[%c0_18, %c0_19, %c0_20, %c0_21] : memref<1x1x16x4xbf16, #tpu.memory_space<vmem>>, vector<1x1x16x4xbf16>
    %19 = vector.shape_cast %18 : vector<1x1x16x4xbf16> to vector<1x16x4xbf16>
    %20 = vector.broadcast %2 : bf16 to vector<1x16x4xbf16>
    %21 = arith.mulf %19, %20 : vector<1x16x4xbf16>
    %c0_22 = arith.constant 0 : index
    %c0_23 = arith.constant 0 : index
    %c0_24 = arith.constant 0 : index
    %c0_25 = arith.constant 0 : index
    %22 = vector.load %arg7[%c0_22, %c0_23, %c0_24, %c0_25] : memref<1x1x16x4xbf16, #tpu.memory_space<vmem>>, vector<1x1x16x4xbf16>
    %23 = vector.shape_cast %22 : vector<1x1x16x4xbf16> to vector<1x16x4xbf16>
    %24 = vector.broadcast %5 : bf16 to vector<1x16x4xbf16>
    %25 = arith.mulf %23, %24 : vector<1x16x4xbf16>
    %26 = tpu.concatenate %11, %21 in 2 : vector<1x16x4xbf16>, vector<1x16x4xbf16> -> vector<1x16x8xbf16>
    %27 = tpu.concatenate %7, %17 in 2 : vector<8x16x4xbf16>, vector<8x16x4xbf16> -> vector<8x16x8xbf16>
    %28 = tpu.concatenate %15, %25 in 2 : vector<1x16x4xbf16>, vector<1x16x4xbf16> -> vector<1x16x8xbf16>
    %29 = tpu.concatenate %26, %27, %28 in 0 : vector<1x16x8xbf16>, vector<8x16x8xbf16>, vector<1x16x8xbf16> -> vector<10x16x8xbf16>
    %cst_26 = arith.constant 0.000000e+00 : bf16
    %30 = vector.broadcast %cst_26 : bf16 to vector<10x1x8xbf16>
    %31 = tpu.concatenate %30, %29, %30 in 1 : vector<10x1x8xbf16>, vector<10x16x8xbf16>, vector<10x1x8xbf16> -> vector<10x18x8xbf16>
    %32 = vector.extract_strided_slice %31 {offsets = [0, 0, 0], sizes = [8, 16, 8], strides = [1, 1, 1]} : vector<10x18x8xbf16> to vector<8x16x8xbf16>
    %33 = vector.extract_strided_slice %31 {offsets = [0, 1, 0], sizes = [8, 16, 8], strides = [1, 1, 1]} : vector<10x18x8xbf16> to vector<8x16x8xbf16>
    %34 = vector.extract_strided_slice %31 {offsets = [0, 2, 0], sizes = [8, 16, 8], strides = [1, 1, 1]} : vector<10x18x8xbf16> to vector<8x16x8xbf16>
    %35 = vector.extract_strided_slice %31 {offsets = [1, 0, 0], sizes = [8, 16, 8], strides = [1, 1, 1]} : vector<10x18x8xbf16> to vector<8x16x8xbf16>
    %36 = vector.extract_strided_slice %31 {offsets = [1, 1, 0], sizes = [8, 16, 8], strides = [1, 1, 1]} : vector<10x18x8xbf16> to vector<8x16x8xbf16>
    %37 = vector.extract_strided_slice %31 {offsets = [1, 2, 0], sizes = [8, 16, 8], strides = [1, 1, 1]} : vector<10x18x8xbf16> to vector<8x16x8xbf16>
    %38 = vector.extract_strided_slice %31 {offsets = [2, 0, 0], sizes = [8, 16, 8], strides = [1, 1, 1]} : vector<10x18x8xbf16> to vector<8x16x8xbf16>
    %39 = vector.extract_strided_slice %31 {offsets = [2, 1, 0], sizes = [8, 16, 8], strides = [1, 1, 1]} : vector<10x18x8xbf16> to vector<8x16x8xbf16>
    %40 = vector.extract_strided_slice %31 {offsets = [2, 2, 0], sizes = [8, 16, 8], strides = [1, 1, 1]} : vector<10x18x8xbf16> to vector<8x16x8xbf16>
    %41 = tpu.concatenate %32, %33, %34, %35, %36, %37, %38, %39, %40 in 2 : vector<8x16x8xbf16>, vector<8x16x8xbf16>, vector<8x16x8xbf16>, vector<8x16x8xbf16>, vector<8x16x8xbf16>, vector<8x16x8xbf16>, vector<8x16x8xbf16>, vector<8x16x8xbf16>, vector<8x16x8xbf16> -> vector<8x16x72xbf16>
    %42 = vector.shape_cast %41 : vector<8x16x72xbf16> to vector<128x72xbf16>
    %c0_27 = arith.constant 0 : index
    %c0_28 = arith.constant 0 : index
    %43 = vector.load %arg8[%c0_27, %c0_28] : memref<72x8xbf16, #tpu.memory_space<vmem>>, vector<72x8xbf16>
    %cst_29 = arith.constant dense<0.000000e+00> : vector<128x8xf32>
    %44 = tpu.matmul %42, %43, %cst_29 {dimension_numbers = #tpu.dot_dimension_numbers<[1], [0], [0], [1], [0, 0, 1, 1], [], []>} : vector<128x72xbf16>, vector<72x8xbf16>, vector<128x8xf32> -> vector<128x8xf32>
    %c0_30 = arith.constant 0 : index
    %c0_31 = arith.constant 0 : index
    %45 = vector.load %arg9[%c0_30, %c0_31] : memref<1x8xf32, #tpu.memory_space<vmem>>, vector<1x8xf32>
    %46 = vector.shape_cast %45 : vector<1x8xf32> to vector<8xf32>
    %47 = vector.shape_cast %46 : vector<8xf32> to vector<1x8xf32>
    %48 = vector.broadcast %47 : vector<1x8xf32> to vector<128x8xf32>
    %49 = arith.mulf %44, %48 : vector<128x8xf32>
    %c0_32 = arith.constant 0 : index
    %c0_33 = arith.constant 0 : index
    %50 = vector.load %arg10[%c0_32, %c0_33] : memref<1x8xf32, #tpu.memory_space<vmem>>, vector<1x8xf32>
    %51 = vector.shape_cast %50 : vector<1x8xf32> to vector<8xf32>
    %52 = vector.shape_cast %51 : vector<8xf32> to vector<1x8xf32>
    %53 = vector.broadcast %52 : vector<1x8xf32> to vector<128x8xf32>
    %54 = arith.addf %49, %53 : vector<128x8xf32>
    %cst_34 = arith.constant 0.000000e+00 : f32
    %55 = vector.broadcast %cst_34 : f32 to vector<128x8xf32>
    %56 = arith.maximumf %54, %55 : vector<128x8xf32>
    %57 = vector.shape_cast %56 : vector<128x8xf32> to vector<8x16x8xf32>
    %58 = arith.truncf %57 : vector<8x16x8xf32> to vector<8x16x8xbf16>
    %c0_35 = arith.constant 0 : index
    %c0_36 = arith.constant 0 : index
    %c0_37 = arith.constant 0 : index
    %c0_38 = arith.constant 0 : index
    %59 = vector.load %arg11[%c0_35, %c0_36, %c0_37, %c0_38] : memref<1x8x16x8xbf16, #tpu.memory_space<vmem>>, vector<1x8x16x8xbf16>
    %60 = vector.shape_cast %59 : vector<1x8x16x8xbf16> to vector<8x16x8xbf16>
    %61 = vector.shape_cast %58 : vector<8x16x8xbf16> to vector<1x8x16x8xbf16>
    tpu.vector_store %arg11[%c0_35, %c0_36, %c0_37, %c0_38], %61 {strides = array<i32>} : memref<1x8x16x8xbf16, #tpu.memory_space<vmem>>, vector<1x8x16x8xbf16>,
    return
  }
  func.func @transform_0(%arg0: i32, %arg1: i32) -> (i32, i32, i32, i32) {
    %c0_i32 = arith.constant 0 : i32
    %c0_i32_0 = arith.constant 0 : i32
    %c0_i32_1 = arith.constant 0 : i32
    return %arg0, %arg1, %c0_i32, %c0_i32_0 : i32, i32, i32, i32
  }
  func.func @transform_1(%arg0: i32, %arg1: i32) -> (i32, i32, i32, i32) {
    %c8_i32 = arith.constant 8 : i32
    %0 = arith.muli %arg1, %c8_i32 : i32
    %c1_i32 = arith.constant 1 : i32
    %1 = arith.subi %0, %c1_i32 : i32
    %c0_i32 = arith.constant 0 : i32
    %2 = arith.maxsi %1, %c0_i32 : i32
    %c0_i32_0 = arith.constant 0 : i32
    %c0_i32_1 = arith.constant 0 : i32
    %c0_i32_2 = arith.constant 0 : i32
    return %arg0, %2, %c0_i32_0, %c0_i32_1 : i32, i32, i32, i32
  }
  func.func @transform_2(%arg0: i32, %arg1: i32) -> (i32, i32, i32, i32) {
    %c8_i32 = arith.constant 8 : i32
    %0 = arith.muli %arg1, %c8_i32 : i32
    %c8_i32_0 = arith.constant 8 : i32
    %1 = arith.addi %0, %c8_i32_0 : i32
    %c15_i32 = arith.constant 15 : i32
    %2 = arith.minsi %1, %c15_i32 : i32
    %c0_i32 = arith.constant 0 : i32
    %c0_i32_1 = arith.constant 0 : i32
    %c0_i32_2 = arith.constant 0 : i32
    return %arg0, %2, %c0_i32, %c0_i32_1 : i32, i32, i32, i32
  }
  func.func @transform_3(%arg0: i32, %arg1: i32) -> (i32, i32, i32, i32) {
    %c0_i32 = arith.constant 0 : i32
    %c0_i32_0 = arith.constant 0 : i32
    %c0_i32_1 = arith.constant 0 : i32
    return %arg0, %arg1, %c0_i32, %c0_i32_0 : i32, i32, i32, i32
  }
  func.func @transform_4(%arg0: i32, %arg1: i32) -> (i32, i32, i32, i32) {
    %c8_i32 = arith.constant 8 : i32
    %0 = arith.muli %arg1, %c8_i32 : i32
    %c1_i32 = arith.constant 1 : i32
    %1 = arith.subi %0, %c1_i32 : i32
    %c0_i32 = arith.constant 0 : i32
    %2 = arith.maxsi %1, %c0_i32 : i32
    %c0_i32_0 = arith.constant 0 : i32
    %c0_i32_1 = arith.constant 0 : i32
    %c0_i32_2 = arith.constant 0 : i32
    return %arg0, %2, %c0_i32_0, %c0_i32_1 : i32, i32, i32, i32
  }
  func.func @transform_5(%arg0: i32, %arg1: i32) -> (i32, i32, i32, i32) {
    %c8_i32 = arith.constant 8 : i32
    %0 = arith.muli %arg1, %c8_i32 : i32
    %c8_i32_0 = arith.constant 8 : i32
    %1 = arith.addi %0, %c8_i32_0 : i32
    %c15_i32 = arith.constant 15 : i32
    %2 = arith.minsi %1, %c15_i32 : i32
    %c0_i32 = arith.constant 0 : i32
    %c0_i32_1 = arith.constant 0 : i32
    %c0_i32_2 = arith.constant 0 : i32
    return %arg0, %2, %c0_i32, %c0_i32_1 : i32, i32, i32, i32
  }
  func.func @transform_6(%arg0: i32, %arg1: i32) -> (i32, i32) {
    %c0_i32 = arith.constant 0 : i32
    %c0_i32_0 = arith.constant 0 : i32
    %c0_i32_1 = arith.constant 0 : i32
    return %c0_i32, %c0_i32_0 : i32, i32
  }
  func.func @transform_7(%arg0: i32, %arg1: i32) -> (i32, i32) {
    %c0_i32 = arith.constant 0 : i32
    %c0_i32_0 = arith.constant 0 : i32
    %c0_i32_1 = arith.constant 0 : i32
    return %c0_i32, %c0_i32_0 : i32, i32
  }
  func.func @transform_8(%arg0: i32, %arg1: i32) -> (i32, i32) {
    %c0_i32 = arith.constant 0 : i32
    %c0_i32_0 = arith.constant 0 : i32
    %c0_i32_1 = arith.constant 0 : i32
    return %c0_i32, %c0_i32_0 : i32, i32
  }
  func.func @transform_9(%arg0: i32, %arg1: i32) -> (i32, i32, i32, i32) {
    %c0_i32 = arith.constant 0 : i32
    %c0_i32_0 = arith.constant 0 : i32
    %c0_i32_1 = arith.constant 0 : i32
    return %arg0, %arg1, %c0_i32, %c0_i32_0 : i32, i32, i32, i32
  }
}

module attributes {stable_mosaic.version = 11 : i64} {
  func.func @_conv3x3_bn_relu_kernel(%arg0: i32, %arg1: i32, %arg2: memref<1x8x16x8xbf16, #tpu.memory_space<vmem>>, %arg3: memref<1x1x16x8xbf16, #tpu.memory_space<vmem>>, %arg4: memref<1x1x16x8xbf16, #tpu.memory_space<vmem>>, %arg5: memref<72x8xbf16, #tpu.memory_space<vmem>>, %arg6: memref<1x8xf32, #tpu.memory_space<vmem>>, %arg7: memref<1x8xf32, #tpu.memory_space<vmem>>, %arg8: memref<1x8x16x8xf32, #tpu.memory_space<vmem>>) attributes {dimension_semantics = [#tpu.dimension_semantics<parallel>, #tpu.dimension_semantics<parallel>], iteration_bounds = array<i64: 2, 2>, scalar_prefetch = 0 : i64, scratch_operands = 0 : i64, tpu.core_type = #tpu.core_type<tc>, window_params = [{transform_indices = @transform_0, window_bounds = array<i64: 1, 8, 16, 8>}, {transform_indices = @transform_1, window_bounds = array<i64: 1, 1, 16, 8>}, {transform_indices = @transform_2, window_bounds = array<i64: 1, 1, 16, 8>}, {pipeline_mode = #tpu.pipeline_mode<synchronous>, transform_indices = @transform_3, window_bounds = array<i64: 72, 8>}, {pipeline_mode = #tpu.pipeline_mode<synchronous>, transform_indices = @transform_4, window_bounds = array<i64: 1, 8>}, {pipeline_mode = #tpu.pipeline_mode<synchronous>, transform_indices = @transform_5, window_bounds = array<i64: 1, 8>}, {transform_indices = @transform_6, window_bounds = array<i64: 1, 8, 16, 8>}]} {
    %c0_i32 = arith.constant 0 : i32
    %0 = arith.cmpi sgt, %arg1, %c0_i32 : i32
    %cst = arith.constant 1.000000e+00 : f32
    %cst_0 = arith.constant 0.000000e+00 : f32
    %1 = arith.select %0, %cst, %cst_0 : f32
    %2 = arith.truncf %1 : f32 to bf16
    %c1_i32 = arith.constant 1 : i32
    %3 = arith.cmpi slt, %arg1, %c1_i32 : i32
    %cst_1 = arith.constant 1.000000e+00 : f32
    %cst_2 = arith.constant 0.000000e+00 : f32
    %4 = arith.select %3, %cst_1, %cst_2 : f32
    %5 = arith.truncf %4 : f32 to bf16
    %c0 = arith.constant 0 : index
    %c0_3 = arith.constant 0 : index
    %c0_4 = arith.constant 0 : index
    %c0_5 = arith.constant 0 : index
    %6 = vector.load %arg2[%c0, %c0_3, %c0_4, %c0_5] : memref<1x8x16x8xbf16, #tpu.memory_space<vmem>>, vector<1x8x16x8xbf16>
    %7 = vector.shape_cast %6 : vector<1x8x16x8xbf16> to vector<8x16x8xbf16>
    %c0_6 = arith.constant 0 : index
    %c0_7 = arith.constant 0 : index
    %c0_8 = arith.constant 0 : index
    %c0_9 = arith.constant 0 : index
    %8 = vector.load %arg3[%c0_6, %c0_7, %c0_8, %c0_9] : memref<1x1x16x8xbf16, #tpu.memory_space<vmem>>, vector<1x1x16x8xbf16>
    %9 = vector.shape_cast %8 : vector<1x1x16x8xbf16> to vector<1x16x8xbf16>
    %10 = vector.broadcast %2 : bf16 to vector<1x16x8xbf16>
    %11 = arith.mulf %9, %10 : vector<1x16x8xbf16>
    %c0_10 = arith.constant 0 : index
    %c0_11 = arith.constant 0 : index
    %c0_12 = arith.constant 0 : index
    %c0_13 = arith.constant 0 : index
    %12 = vector.load %arg4[%c0_10, %c0_11, %c0_12, %c0_13] : memref<1x1x16x8xbf16, #tpu.memory_space<vmem>>, vector<1x1x16x8xbf16>
    %13 = vector.shape_cast %12 : vector<1x1x16x8xbf16> to vector<1x16x8xbf16>
    %14 = vector.broadcast %5 : bf16 to vector<1x16x8xbf16>
    %15 = arith.mulf %13, %14 : vector<1x16x8xbf16>
    %16 = tpu.concatenate %11, %7, %15 in 0 : vector<1x16x8xbf16>, vector<8x16x8xbf16>, vector<1x16x8xbf16> -> vector<10x16x8xbf16>
    %cst_14 = arith.constant 0.000000e+00 : bf16
    %17 = vector.broadcast %cst_14 : bf16 to vector<10x1x8xbf16>
    %18 = tpu.concatenate %17, %16, %17 in 1 : vector<10x1x8xbf16>, vector<10x16x8xbf16>, vector<10x1x8xbf16> -> vector<10x18x8xbf16>
    %19 = vector.extract_strided_slice %18 {offsets = [0, 0, 0], sizes = [8, 16, 8], strides = [1, 1, 1]} : vector<10x18x8xbf16> to vector<8x16x8xbf16>
    %20 = vector.extract_strided_slice %18 {offsets = [0, 1, 0], sizes = [8, 16, 8], strides = [1, 1, 1]} : vector<10x18x8xbf16> to vector<8x16x8xbf16>
    %21 = vector.extract_strided_slice %18 {offsets = [0, 2, 0], sizes = [8, 16, 8], strides = [1, 1, 1]} : vector<10x18x8xbf16> to vector<8x16x8xbf16>
    %22 = vector.extract_strided_slice %18 {offsets = [1, 0, 0], sizes = [8, 16, 8], strides = [1, 1, 1]} : vector<10x18x8xbf16> to vector<8x16x8xbf16>
    %23 = vector.extract_strided_slice %18 {offsets = [1, 1, 0], sizes = [8, 16, 8], strides = [1, 1, 1]} : vector<10x18x8xbf16> to vector<8x16x8xbf16>
    %24 = vector.extract_strided_slice %18 {offsets = [1, 2, 0], sizes = [8, 16, 8], strides = [1, 1, 1]} : vector<10x18x8xbf16> to vector<8x16x8xbf16>
    %25 = vector.extract_strided_slice %18 {offsets = [2, 0, 0], sizes = [8, 16, 8], strides = [1, 1, 1]} : vector<10x18x8xbf16> to vector<8x16x8xbf16>
    %26 = vector.extract_strided_slice %18 {offsets = [2, 1, 0], sizes = [8, 16, 8], strides = [1, 1, 1]} : vector<10x18x8xbf16> to vector<8x16x8xbf16>
    %27 = vector.extract_strided_slice %18 {offsets = [2, 2, 0], sizes = [8, 16, 8], strides = [1, 1, 1]} : vector<10x18x8xbf16> to vector<8x16x8xbf16>
    %28 = tpu.concatenate %19, %20, %21, %22, %23, %24, %25, %26, %27 in 2 : vector<8x16x8xbf16>, vector<8x16x8xbf16>, vector<8x16x8xbf16>, vector<8x16x8xbf16>, vector<8x16x8xbf16>, vector<8x16x8xbf16>, vector<8x16x8xbf16>, vector<8x16x8xbf16>, vector<8x16x8xbf16> -> vector<8x16x72xbf16>
    %29 = vector.shape_cast %28 : vector<8x16x72xbf16> to vector<128x72xbf16>
    %c0_15 = arith.constant 0 : index
    %c0_16 = arith.constant 0 : index
    %30 = vector.load %arg5[%c0_15, %c0_16] : memref<72x8xbf16, #tpu.memory_space<vmem>>, vector<72x8xbf16>
    %cst_17 = arith.constant dense<0.000000e+00> : vector<128x8xf32>
    %31 = tpu.matmul %29, %30, %cst_17 {dimension_numbers = #tpu.dot_dimension_numbers<[1], [0], [0], [1], [0, 0, 1, 1], [], []>} : vector<128x72xbf16>, vector<72x8xbf16>, vector<128x8xf32> -> vector<128x8xf32>
    %c0_18 = arith.constant 0 : index
    %c0_19 = arith.constant 0 : index
    %32 = vector.load %arg6[%c0_18, %c0_19] : memref<1x8xf32, #tpu.memory_space<vmem>>, vector<1x8xf32>
    %33 = vector.shape_cast %32 : vector<1x8xf32> to vector<8xf32>
    %34 = vector.shape_cast %33 : vector<8xf32> to vector<1x8xf32>
    %35 = vector.broadcast %34 : vector<1x8xf32> to vector<128x8xf32>
    %36 = arith.mulf %31, %35 : vector<128x8xf32>
    %c0_20 = arith.constant 0 : index
    %c0_21 = arith.constant 0 : index
    %37 = vector.load %arg7[%c0_20, %c0_21] : memref<1x8xf32, #tpu.memory_space<vmem>>, vector<1x8xf32>
    %38 = vector.shape_cast %37 : vector<1x8xf32> to vector<8xf32>
    %39 = vector.shape_cast %38 : vector<8xf32> to vector<1x8xf32>
    %40 = vector.broadcast %39 : vector<1x8xf32> to vector<128x8xf32>
    %41 = arith.addf %36, %40 : vector<128x8xf32>
    %cst_22 = arith.constant 0.000000e+00 : f32
    %42 = vector.broadcast %cst_22 : f32 to vector<128x8xf32>
    %43 = arith.maximumf %41, %42 : vector<128x8xf32>
    %44 = vector.shape_cast %43 : vector<128x8xf32> to vector<8x16x8xf32>
    %c0_23 = arith.constant 0 : index
    %c0_24 = arith.constant 0 : index
    %c0_25 = arith.constant 0 : index
    %c0_26 = arith.constant 0 : index
    %45 = vector.load %arg8[%c0_23, %c0_24, %c0_25, %c0_26] : memref<1x8x16x8xf32, #tpu.memory_space<vmem>>, vector<1x8x16x8xf32>
    %46 = vector.shape_cast %45 : vector<1x8x16x8xf32> to vector<8x16x8xf32>
    %47 = vector.shape_cast %44 : vector<8x16x8xf32> to vector<1x8x16x8xf32>
    tpu.vector_store %arg8[%c0_23, %c0_24, %c0_25, %c0_26], %47 {strides = array<i32>} : memref<1x8x16x8xf32, #tpu.memory_space<vmem>>, vector<1x8x16x8xf32>,
    return
  }
  func.func @transform_0(%arg0: i32, %arg1: i32) -> (i32, i32, i32, i32) {
    %c0_i32 = arith.constant 0 : i32
    %c0_i32_0 = arith.constant 0 : i32
    %c0_i32_1 = arith.constant 0 : i32
    return %arg0, %arg1, %c0_i32, %c0_i32_0 : i32, i32, i32, i32
  }
  func.func @transform_1(%arg0: i32, %arg1: i32) -> (i32, i32, i32, i32) {
    %c8_i32 = arith.constant 8 : i32
    %0 = arith.muli %arg1, %c8_i32 : i32
    %c1_i32 = arith.constant 1 : i32
    %1 = arith.subi %0, %c1_i32 : i32
    %c0_i32 = arith.constant 0 : i32
    %2 = arith.maxsi %1, %c0_i32 : i32
    %c0_i32_0 = arith.constant 0 : i32
    %c0_i32_1 = arith.constant 0 : i32
    %c0_i32_2 = arith.constant 0 : i32
    return %arg0, %2, %c0_i32_0, %c0_i32_1 : i32, i32, i32, i32
  }
  func.func @transform_2(%arg0: i32, %arg1: i32) -> (i32, i32, i32, i32) {
    %c8_i32 = arith.constant 8 : i32
    %0 = arith.muli %arg1, %c8_i32 : i32
    %c8_i32_0 = arith.constant 8 : i32
    %1 = arith.addi %0, %c8_i32_0 : i32
    %c15_i32 = arith.constant 15 : i32
    %2 = arith.minsi %1, %c15_i32 : i32
    %c0_i32 = arith.constant 0 : i32
    %c0_i32_1 = arith.constant 0 : i32
    %c0_i32_2 = arith.constant 0 : i32
    return %arg0, %2, %c0_i32, %c0_i32_1 : i32, i32, i32, i32
  }
  func.func @transform_3(%arg0: i32, %arg1: i32) -> (i32, i32) {
    %c0_i32 = arith.constant 0 : i32
    %c0_i32_0 = arith.constant 0 : i32
    %c0_i32_1 = arith.constant 0 : i32
    return %c0_i32, %c0_i32_0 : i32, i32
  }
  func.func @transform_4(%arg0: i32, %arg1: i32) -> (i32, i32) {
    %c0_i32 = arith.constant 0 : i32
    %c0_i32_0 = arith.constant 0 : i32
    %c0_i32_1 = arith.constant 0 : i32
    return %c0_i32, %c0_i32_0 : i32, i32
  }
  func.func @transform_5(%arg0: i32, %arg1: i32) -> (i32, i32) {
    %c0_i32 = arith.constant 0 : i32
    %c0_i32_0 = arith.constant 0 : i32
    %c0_i32_1 = arith.constant 0 : i32
    return %c0_i32, %c0_i32_0 : i32, i32
  }
  func.func @transform_6(%arg0: i32, %arg1: i32) -> (i32, i32, i32, i32) {
    %c0_i32 = arith.constant 0 : i32
    %c0_i32_0 = arith.constant 0 : i32
    %c0_i32_1 = arith.constant 0 : i32
    return %arg0, %arg1, %c0_i32, %c0_i32_0 : i32, i32, i32, i32
  }
}

</mosaic_0001>

<bundles_post_ra>
// kernel: upsampling_concat_forward.3
= control target key start
LH: loop header
LB: loop body
LE: loop exit
PB: predicated region body
PF: predicated region fallthrough
CT: control target
= control target key end

     0   :  { %s1709_s21 = smov 0   ;;  %s1711_s22 = smov 0   ;;  %s2277_s0 = inlined_call_operand.vmem [shape: bf16[2,16,16,8], index: 0, kind: input, shape index: {}, may-alias: {0,1,2}]   ;;  %s2278_s1 = inlined_call_operand.vmem [shape: bf16[2,16,16,8], index: 1, kind: input, shape index: {}, may-alias: {0,1,2}]   ;;  %s2279_s2 = inlined_call_operand.vmem [shape: bf16[2,16,16,8], index: 2, kind: input, shape index: {}, may-alias: {0,1,2}]   ;;  %s2280_s3 = inlined_call_operand.vmem [shape: bf16[72,8], index: 3, kind: input, shape index: {}]   ;;  %s2281_s4 = inlined_call_operand.vmem [shape: f32[1,8], index: 4, kind: input, shape index: {}]   ;;  %s2282_s5 = inlined_call_operand.vmem [shape: f32[1,8], index: 5, kind: input, shape index: {}]   ;;  %s2283_s6 = inlined_call_operand.vmem [shape: f32[2,16,16,8], index: 6, kind: output, shape index: {}]  }
   0x1   :  { %s1713_s23 = smov 0   ;;  %s1715_s24 = smov 0  }
   0x2   :  { %s1717_s25 = smov 0  }
   0x3 LB: > { %s25_s26 = sadd.s32 1, %s1656_s23  ;;  %s28_s27 = sadd.s32 1, %s1660_s24  ;;  %s1664_s25 = sphi %s1717_s25, %s16_s25   ;;  %s1660_s24 = sphi %s1715_s24, %s2290_s24   ;;  %s1656_s23 = sphi %s1713_s23, %s2289_s23   ;;  %s1652_s22 = sphi %s1711_s22, %s2288_s22   ;;  %s1648_s21 = sphi %s1709_s21, %s2287_s21  }
   0x4   : > { %p26_p0 = scmp.ge.s32.totalorder %s25_s26, 2  ;;  %p1459_p1 = scmp.ge.s32.totalorder %s1664_s25, 1 }
   0x5   : > { %p298_p2 = scmp.lt.s32.totalorder %s1664_s25, 5 }
   0x6   : > { %s2292_s26 = smov (%p26_p0, %s25_s26), 0  ;;  %s2294_s27 = smov (!%p26_p0, %s28_s27), %s1660_s24 }
   0x7   : > { %p299_p3 = pnand %p1459_p1, %p298_p2  ;;  %p30_p4 = scmp.ge.s32.totalorder %s2294_s27, 2 }
   0x8   : > { %s1742_s28 = sshll.u32 (!%p299_p3), %s1648_s21, 3  ;;  %p365_p5 = scmp.lt.s32.totalorder (!%p299_p3), %s1652_s22, 1  ;;  %vm617_vm0 = vcmask (!%p299_p3), 1040384   ;;  %vm618_vm1 = vsmask.f32 (!%p299_p3), 256  ;;  %vm769_vm3 = vcmask (!%p299_p3), 1046528  }
   0x9   : > { %s2296_s27 = smov (%p30_p4, %s2294_s27), 0  ;;  %302 = sbr.rel (%p299_p3) target bundleno = 494 (0x1ee), region = 44 }
   0xa   : > { %p367_p6 = scmp.lt.s32.totalorder (!%p299_p3), %s1742_s28, 15  ;;  %s1465_s10 = sadd.s32 (!%p299_p3), 4294967295, %s1742_s28  ;;  %vm1764_vm2 = vmand (!%p299_p3), %vm617_vm0, %vm618_vm1  ;;  %vm640_vm4 = vsmask.f32 (!%p299_p3), 7424  ;;  %vm1129_vm5 = vcmask (!%p299_p3), 1043456   ;;  %vm940_vm6 = vcmask (!%p299_p3), 64512  }
   0xb   : > { %p377_p7 = scmp.gt.s32.totalorder (!%p299_p3), %s1465_s10, 0  ;;  %p1466_p8 = scmp.lt.s32.totalorder (!%p299_p3), %s1465_s10, 15  ;;  %vm957_vm7 = vcmask (!%p299_p3), 130048   ;;  %vm974_vm8 = vcmask (!%p299_p3), 195584   ;;  %vm1008_vm9 = vcmask (!%p299_p3), 326656   ;;  %vm991_vm10 = vcmask (!%p299_p3), 261120  }
   0xc   : > { %p421_p9 = scmp.gt.s32.totalorder (!%p299_p3), %s1648_s21, 0  ;;  %s1666_s16 = smov (!%p299_p3), 24   ;;  %vm1025_vm11 = vcmask (!%p299_p3), 392192   ;;  %vm1042_vm12 = vcmask (!%p299_p3), 457728   ;;  %vm1059_vm13 = vcmask (!%p299_p3), 523264   ;;  %vm1112_vm14 = vcmask (!%p299_p3), 588800  }
   0xd   : > { %p433_p12 = scmp.lt.s32.totalorder (!%p299_p3), %s1648_s21, 1 }
  0x10   : > { %s2298_s22 = smov (!%p365_p5, %s1652_s22), 1 }
  0x11   : > { %s368_s29 = scalar_select %p367_p6, %s1742_s28, 15 }
  0x12   : > { %s1746_s30 = sshll.u32 %s2298_s22, 5 }
  0x13   : > { %s1461_s7 = sshll.u32 %s368_s29, 1 }
  0x14   : > { %s1749_s8 = sadd.s32 %s1746_s30, %s1461_s7  ;;  %s393_s7 = sadd.s32 8, %s1742_s28 }
  0x15   : > { %s1463_s9 = sshll.u32 %s1749_s8, 2  ;;  %p1844_p11 = scmp.lt.s32.totalorder %s393_s7, 15 }
  0x16   : > { %s1756_s13 = scalar_lea.vmem %s2277_s0, %s1463_s9  ;;  %s1667_s9 = smov 16  }
  0x17   : > { %v1613_v0 = vld [vmem:[%s1756_s13 + $0x20] sm:$0xff]   ;;  %s378_s14 = scalar_select %p377_p7, %s1465_s10, 0  ;;  %v1615_v6 = vld [vmem:[%s1756_s13 + $0x28] sm:$0xff]   ;;  %v1617_v9 = vld [vmem:[%s1756_s13 + $0x18] sm:$0xff]  }
  0x18   : > { %v1614_v1 = vld [vmem:[%s1756_s13] sm:$0xff]   ;;  %v563_v2 = vshrl.u32 %v1613_v0, 16  ;;  %v566_v3 = vshll.u32 %v1613_v0, 16  ;;  %v1616_v7 = vld [vmem:[%s1756_s13 + $0x8] sm:$0xff]   ;;  %v570_v12 = vshrl.u32 %v1615_v6, 16  ;;  %v573_v13 = vshll.u32 %v1615_v6, 16 }
  0x19   : > { %v535_v4 = vshrl.u32 %v1614_v1, 16  ;;  %v538_v5 = vshll.u32 %v1614_v1, 16  ;;  %v542_v14 = vshrl.u32 %v1616_v7, 16  ;;  %v545_v16 = vshll.u32 %v1616_v7, 16  ;;  %s2300_s14 = smov (!%p1466_p8, %s378_s14), 15  ;;  %s2304_s7 = smov (!%p1844_p11, %s393_s7), 15 }
  0x1a   : > { %v565_v8 = vrot.slane %v563_v2, 7  ;;  %v556_v17 = vshrl.u32 %v1617_v9, 16  ;;  %v559_v18 = vshll.u32 %v1617_v9, 16  ;;  %v1769_v20 = vrot.slane %v570_v12, 7  ;;  %s1471_s15 = sshll.u32 %s2300_s14, 1  ;;  %v1620_v12 = vld [vmem:[%s1756_s13 + $0x38] sm:$0xff]  }
  0x1b   : > { %v537_v11 = vrot.slane %v535_v4, 7  ;;  %v544_v21 = vrot.slane %v542_v14, 7  ;;  %s1801_s17 = sadd.s32 %s1471_s15, %s1746_s30  ;;  %s2306_s7 = smov (!%p1844_p11, %s2304_s7), 15 }
  0x1c   : > { %v568_v15 = vor.u32 %v566_v3, %v565_v8  ;;  %v558_v24 = vrot.slane %v556_v17, 7  ;;  %v575_v26 = vor.u32 %v573_v13, %v1769_v20  ;;  %v635_v32 = vsel %vm1764_vm2, %v565_v8, 0  ;;  %s1810_s18 = scalar_select %p421_p9, 1.0, 0.0 }
  0x1d   : > { %v540_v19 = vor.u32 %v538_v5, %v537_v11  ;;  %v631_v22 = vsel %vm1764_vm2, %v537_v11, 0  ;;  %v547_v27 = vor.u32 %v545_v16, %v544_v21  ;;  %v786_v40 = vrot.slane %v635_v32, 1  ;;  %s1473_s19 = sshll.u32 %s1801_s17, 2 }
  0x1e   : > { %v1775_v23 = vsel %vm1764_vm2, 0, %v568_v15  ;;  %v774_v28 = vrot.slane %v631_v22, 1  ;;  %v561_v29 = vor.u32 %v559_v18, %v558_v24  ;;  %v634_v30 = vsel %vm1764_vm2, %v558_v24, 0  ;;  %s425_s20 = sshrl.u32 %s1810_s18, 16  ;;  %p424_p10 = scmp.ne.f32.partialorder %s1810_s18, %s1810_s18  ;;  %v1619_v15 = vld [vmem:[%s1756_s13 + $0x30] sm:$0xff]  }
  0x1f   : > { %819 = vrot.lane.b32.xlu1 %v1775_v23, %s1666_s16  ;;  %v1782_v25 = vsel %vm1764_vm2, 0, %v540_v19  ;;  %v1794_v33 = vsel %vm1764_vm2, 0, %v575_v26  ;;  %v1798_v34 = vsel %vm1764_vm2, 0, %v547_v27  ;;  %v783_v35 = vrot.slane %v634_v30, 1  ;;  %s426_s22 = sand.u32 1, %s425_s20  ;;  %s387_s14 = scalar_lea.vmem %s2278_s1, %s1473_s19 }
  0x20   : > { %811 = vrot.lane.b32.xlu0 %v1782_v25, %s1666_s16  ;;  %v773_v31 = vrot.slane %v1782_v25, 1  ;;  %v697_v36 = vshll.u32 %v634_v30, 16  ;;  %v1805_v37 = vsel %vm1764_vm2, 0, %v561_v29  ;;  %v785_v38 = vrot.slane %v1775_v23, 1  ;;  %s427_s29 = sadd.s32 32767, %s426_s22  ;;  %s1668_s19 = smov 8  }
  0x21   : > { %v782_v39 = vrot.slane %v1805_v37, 1  ;;  %v690_v41 = vshrl.u32 %v1805_v37, 16  ;;  %v692_v42 = vshll.u32 %v1805_v37, 16  ;;  %v654_v44 = vshrl.u32 %v1782_v25, 16  ;;  %s428_s10 = sadd.s32 %s427_s29, %s1810_s18  ;;  %v461_v1 = vld [vmem:[%s387_s14] sm:$0xf] }
  0x22   : > { %v1820_v43 = vsel %vm769_vm3, %v773_v31, %v774_v28  ;;  %v656_v45 = vshll.u32 %v1782_v25, 16  ;;  %v661_v46 = vshll.u32 %v631_v22, 16  ;;  %v699_v49 = vrot.slane %v697_v36, 1  ;;  %s429_s15 = sand.u32 4294901760, %s428_s10  ;;  %v462_v5 = vld [vmem:[%s387_s14 + $0x4] sm:$0xf] }
  0x23   : > { %821 = vrot.lane.b32.xlu1 %v1794_v33, %s1666_s16  ;;  %v1827_v47 = vsel %vm769_vm3, %v782_v39, %v783_v35  ;;  %v694_v48 = vrot.slane %v692_v42, 1  ;;  %v668_v50 = vshll.u32 %v1798_v34, 16  ;;  %v1834_v52 = vsel %vm1764_vm2, %v544_v21, 0  ;;  %s2302_s15 = smov (%p424_p10, %s429_s15), 2143289344  ;;  %s1669_s29 = smov 32   ;;  %v1906_v31 = vld [vmem:[%s1756_s13 + $0x10] sm:$0xff]  }
  0x24   : > { %813 = vrot.lane.b32.xlu0 %v1798_v34, %s1666_s16  ;;  %v658_v51 = vrot.slane %v656_v45, 1  ;;  %v704_v53 = vshll.u32 %v1775_v23, 16  ;;  %v1841_v54 = vsel %vm769_vm3, %v785_v38, %v786_v40  ;;  %v663_v56 = vrot.slane %v661_v46, 1  ;;  %s432_s17 = sshrl.u32 %s2302_s15, 16  ;;  %s1478_s10 = sshll.u32 %s2306_s7, 1 }
  0x25   : > { %v695_v55 = vor.u32 %v694_v48, %v690_v41  ;;  %v702_v58 = vshrl.u32 %v1775_v23, 16  ;;  %v709_v60 = vshll.u32 %v635_v32, 16  ;;  %v666_v62 = vshrl.u32 %v1798_v34, 16  ;;  %s463_s18 = sshll.u32 %s432_s17, 16  ;;  %s402_s21 = sadd.s32 %s1478_s10, %s1746_s30 }
  0x26   : > { %v659_v57 = vor.u32 %v658_v51, %v654_v44  ;;  %v706_v59 = vrot.slane %v704_v53, 1  ;;  %v670_v63 = vrot.slane %v668_v50, 1  ;;  %v673_v0 = vshll.u32 %v1834_v52, 16  ;;  %s464_s20 = sor.u32 %s463_s18, %s432_s17  ;;  %s1480_s28 = sshll.u32 %s402_s21, 2 }
  0x27   : > { %802 = vrot.lane.b32.xlu1 %v1827_v47, %s1667_s9  ;;  %v1855_v61 = vsel %vm640_vm4, %v695_v55, %v699_v49  ;;  %v711_v4 = vrot.slane %v709_v60, 1  ;;  %v716_v6 = vshll.u32 %v1794_v33, 16  ;;  %v1876_v9 = vsel %vm1764_vm2, %v1769_v20, 0  ;;  %s1886_s22 = scalar_select %p433_p12, 1.0, 0.0 }
  0x28   : > { %796 = vrot.lane.b32.xlu0 %v1820_v43, %s1667_s9  ;;  %v664_v2 = vsel %vm640_vm4, %v659_v57, %v663_v56  ;;  %v707_v3 = vor.u32 %v706_v59, %v702_v58  ;;  %v671_v7 = vor.u32 %v670_v63, %v666_v62  ;;  %v675_v8 = vrot.slane %v673_v0, 1  ;;  %s404_s17 = scalar_lea.vmem %s2279_s2, %s1480_s28  ;;  %s1670_s10 = smov 40  }
  0x29   : > { %v465_v11 = vstv %s464_s20  ;;  %v714_v17 = vshrl.u32 %v1794_v33, 16  ;;  %v718_v18 = vrot.slane %v716_v6, 1  ;;  %v721_v19 = vshll.u32 %v1876_v9, 16  ;;  %p436_p13 = scmp.ne.f32.partialorder %s1886_s22, %s1886_s22  ;;  %s437_s11 = sshrl.u32 %s1886_s22, 16  ;;  %v469_v57 = vld [vmem:[%s404_s17] sm:$0xf] }
  0x2a   : > { %v467_v13 = vmul.bf16 %v465_v11, %v461_v1  ;;  %v468_v14 = vmul.bf16 %v465_v11, %v462_v5  ;;  %v1890_v16 = vsel %vm640_vm4, %v707_v3, %v711_v4  ;;  %v1895_v20 = vsel %vm640_vm4, %v671_v7, %v675_v8  ;;  %s438_s12 = sand.u32 1, %s437_s11  ;;  %v470_v63 = vld [vmem:[%s404_s17 + $0x4] sm:$0xf]  ;;  %s1671_s28 = smov 48  }
  0x2b   : > { %804 = vrot.lane.b32.xlu1 %v1841_v54, %s1667_s9  ;;  %v584_v22 = vshrl.u32 %v1620_v12, 16  ;;  %v577_v27 = vshrl.u32 %v1619_v15, 16  ;;  %v719_v28 = vor.u32 %v718_v18, %v714_v17  ;;  %v723_v29 = vrot.slane %v721_v19, 1  ;;  %s439_s30 = sadd.s32 32767, %s438_s12  ;;  %s1672_s15 = smov 56  }
  0x2c   : > { %745 = vrot.lane.b32.xlu0 %v1855_v61, %s1668_s19  ;;  %v1485_v21 = vcombine.low %v467_v13, %v468_v14  ;;  %v587_v32 = vshll.u32 %v1620_v12, 16  ;;  %s440_s7 = sadd.s32 %s439_s30, %s1886_s22  ;;  %v788_v35 = vrot.slane %v1794_v33, 1  ;;  %v580_v41 = vshll.u32 %v1619_v15, 16 }
  0x2d   : > { %v586_v36 = vrot.slane %v584_v22, 7  ;;  %s441_s18 = sand.u32 4294901760, %s440_s7  ;;  %v579_v40 = vrot.slane %v577_v27, 7  ;;  %v1921_v44 = vsel %vm640_vm4, %v719_v28, %v723_v29  ;;  %v789_v46 = vrot.slane %v1876_v9, 1 }
  0x2e   : > { %v528_v24 = vshrl.u32 %v1485_v21, 16  ;;  %v531_v26 = vshll.u32 %v1485_v21, 16  ;;  %s2308_s18 = smov (%p436_p13, %s441_s18), 2143289344  ;;  %v549_v49 = vshrl.u32 %v1906_v31, 16  ;;  %v552_v14 = vshll.u32 %v1906_v31, 16 }
  0x2f   : > { %739 = vrot.lane.b32.xlu1 %v664_v2, %s1668_s19  ;;  %v589_v50 = vor.u32 %v587_v32, %v586_v36  ;;  %v638_v51 = vsel %vm1764_vm2, %v586_v36, 0  ;;  %s444_s13 = sshrl.u32 %s2308_s18, 16  ;;  %v582_v59 = vor.u32 %v580_v41, %v579_v40  ;;  %v1952_v17 = vsel %vm769_vm3, %v788_v35, %v789_v46 }
  0x30   : > { %839 = vrot.lane.b32.xlu0 %v664_v2, %s1669_s29  ;;  %v530_v30 = vrot.slane %v528_v24, 7  ;;  %s471_s20 = sshll.u32 %s444_s13, 16  ;;  %v835_v62 = vshll.u32 %v638_v51, 16  ;;  %v857_v6 = vrot.slane %v638_v51, 1  ;;  %v551_v13 = vrot.slane %v549_v49, 7 }
  0x31   : > { %v1938_v60 = vsel %vm1764_vm2, 0, %v589_v50  ;;  %s472_s22 = sor.u32 %s471_s20, %s444_s13  ;;  %v776_v21 = vrot.slane %v1798_v34, 1  ;;  %v777_v22 = vrot.slane %v1834_v52, 1  ;;  %v1960_v24 = vsel %vm1764_vm2, 0, %v582_v59 }
  0x32   : > { %v533_v38 = vor.u32 %v531_v26, %v530_v30  ;;  %v630_v39 = vsel %vm1764_vm2, %v530_v30, 0  ;;  %v828_v2 = vshrl.u32 %v1938_v60, 16  ;;  %v830_v3 = vshll.u32 %v1938_v60, 16 }
  0x33   : > { %747 = vrot.lane.b32.xlu1 %v1890_v16, %s1668_s19  ;;  %v771_v42 = vrot.slane %v630_v39, 1  ;;  %v649_v45 = vshll.u32 %v630_v39, 16  ;;  %v837_v4 = vrot.slane %v835_v62, 1  ;;  %v856_v5 = vrot.slane %v1938_v60, 1 }
  0x34   : > { %841 = vrot.lane.b32.xlu0 %v1895_v20, %s1669_s29  ;;  %v1926_v48 = vsel %vm1764_vm2, 0, %v533_v38  ;;  %v473_v7 = vstv %s472_s22  ;;  %v832_v9 = vrot.slane %v830_v3, 1  ;;  %v554_v30 = vor.u32 %v552_v14, %v551_v13  ;;  %s1673_s22 = smov 64  }
  0x35   : > { %v770_v53 = vrot.slane %v1926_v48, 1  ;;  %v642_v55 = vshrl.u32 %v1926_v48, 16  ;;  %v644_v56 = vshll.u32 %v1926_v48, 16  ;;  %v651_v58 = vrot.slane %v649_v45, 1 }
  0x36   : > { %v475_v11 = vmul.bf16 %v473_v7, %v469_v57  ;;  %v476_v12 = vmul.bf16 %v473_v7, %v470_v63  ;;  %v1949_v15 = vsel %vm769_vm3, %v856_v5, %v857_v6  ;;  %v833_v18 = vor.u32 %v832_v9, %v828_v2  ;;  %v1623_v63 = vld [vmem:[%s2280_s3 + $0x10] sm:$0xff]   ;;  %v1624_v6 = vld [vmem:[%s2280_s3 + $0x18] sm:$0xff]  }
  0x37   : > { %847 = vrot.lane.b32.xlu1 %v1890_v16, %s1669_s29  ;;  %v772_v0 = vsel %vm769_vm3, %v770_v53, %v771_v42  ;;  %v646_v1 = vrot.slane %v644_v56, 1  ;;  %v728_v52 = vshll.u32 %v1960_v24, 16  ;;  %v1975_v32 = vsel %vm1764_vm2, %v579_v40, 0  ;;  %v1622_v42 = vld [vmem:[%s2280_s3 + $0x8] sm:$0xff]  }
  0x38   : > { %794 = vrot.lane.b32.xlu0 %v772_v0, %s1667_s9  ;;  %v1494_v19 = vcombine.low %v475_v11, %v476_v12  ;;  %v1964_v27 = vsel %vm640_vm4, %v833_v18, %v837_v4  ;;  %v1978_v35 = vsel %vm769_vm3, %v776_v21, %v777_v22  ;;  %v1986_v39 = vsel %vm1764_vm2, 0, %v554_v30  ;;  %v1625_v11 = vld [vmem:[%s2280_s3 + $0x20] ss:$0 sps:$4 sm:$0xff]  }
  0x39   : > { %v647_v8 = vor.u32 %v646_v1, %v642_v55  ;;  %v726_v45 = vshrl.u32 %v1960_v24, 16  ;;  %v730_v46 = vrot.slane %v728_v52, 1  ;;  %v733_v49 = vshll.u32 %v1975_v32, 16 }
  0x3a   : > { %v591_v28 = vshrl.u32 %v1494_v19, 16  ;;  %v594_v29 = vshll.u32 %v1494_v19, 16  ;;  %v680_v56 = vshll.u32 %v1986_v39, 16  ;;  %v633_v57 = vsel %vm1764_vm2, %v551_v13, 0 }
  0x3b   : > { %849 = vrot.lane.b32.xlu1 %v1921_v44, %s1669_s29  ;;  %v652_v26 = vsel %vm640_vm4, %v647_v8, %v651_v58  ;;  %v731_v0 = vor.u32 %v730_v46, %v726_v45  ;;  %v735_v1 = vrot.slane %v733_v49, 1  ;;  %v678_v10 = vshrl.u32 %v1986_v39, 16 }
  0x3c   : > { %859 = vrot.lane.b32.xlu0 %v1820_v43, %s1670_s10  ;;  %v1621_v43 = vld [vmem:[%s2280_s3] sm:$0xff]   ;;  %v593_v31 = vrot.slane %v591_v28, 7  ;;  %v682_v3 = vrot.slane %v680_v56, 1  ;;  %v685_v4 = vshll.u32 %v633_v57, 16  ;;  %v1131_v12 = vsel %vm1129_vm5, %v1625_v11, 0 }
  0x3d   : > { %1527 = vmatprep.subr.bf16.mxu0 %v1621_v43  ;;  %1553 = vmatprep.subr.bf16.mxu1 %v1621_v43  ;;  %v736_v7 = vsel %vm640_vm4, %v731_v0, %v735_v1  ;;  %v791_v14 = vrot.slane %v1960_v24, 1  ;;  %v792_v18 = vrot.slane %v1975_v32, 1  ;;  %v779_v21 = vrot.slane %v1986_v39, 1 }
  0x3e   : > { %v596_v36 = vor.u32 %v594_v29, %v593_v31  ;;  %v639_v38 = vsel %vm1764_vm2, %v593_v31, 0  ;;  %1528 = vmatpush3.bf16.msra.mxu0 %v1621_v43  ;;  %1558 = vmatpush3.bf16.msra.mxu1 %v1621_v43  ;;  %v683_v8 = vor.u32 %v682_v3, %v678_v10  ;;  %v687_v9 = vrot.slane %v685_v4, 1 }
  0x3f   : > { %867 = vrot.lane.b32.xlu1 %v1841_v54, %s1670_s10  ;;  %v900_v40 = vshll.u32 %v639_v38, 16  ;;  %v922_v41 = vrot.slane %v639_v38, 1  ;;  %1529 = vmatprep.subr.bf16.mxu0 %v1622_v42  ;;  %v793_v19 = vsel %vm769_vm3, %v791_v14, %v792_v18  ;;  %v780_v22 = vrot.slane %v633_v57, 1 }
  0x40   : > { %737 = vrot.lane.b32.xlu0 %v652_v26, %s1668_s19  ;;  %v1995_v50 = vsel %vm1764_vm2, 0, %v596_v36  ;;  %1554 = vmatprep.subr.bf16.mxu1 %v1622_v42  ;;  %v688_v13 = vsel %vm640_vm4, %v683_v8, %v687_v9 }
  0x41   : > { %v893_v51 = vshrl.u32 %v1995_v50, 16  ;;  %v895_v53 = vshll.u32 %v1995_v50, 16  ;;  %v921_v55 = vrot.slane %v1995_v50, 1  ;;  %v902_v59 = vrot.slane %v900_v40, 1 }
  0x42   : > { %1530 = vmatpush3.bf16.msra.mxu0 %v1622_v42  ;;  %1559 = vmatpush3.bf16.msra.mxu1 %v1622_v42  ;;  %v781_v26 = vsel %vm769_vm3, %v779_v21, %v780_v22 }
  0x43   : > { %869 = vrot.lane.b32.xlu1 %v1952_v17, %s1670_s10  ;;  %v897_v58 = vrot.slane %v895_v53, 1  ;;  %v2008_v62 = vsel %vm769_vm3, %v921_v55, %v922_v41  ;;  %1531 = vmatprep.subr.bf16.mxu0 %v1623_v63 }
  0x44   : > { %861 = vrot.lane.b32.xlu0 %v1978_v35, %s1670_s10  ;;  %1555 = vmatprep.subr.bf16.mxu1 %v1623_v63 }
  0x45   : > { %v898_v2 = vor.u32 %v897_v58, %v893_v51 }
  0x46   : > { %1532 = vmatpush3.bf16.msra.mxu0 %v1623_v63  ;;  %1560 = vmatpush3.bf16.msra.mxu1 %v1623_v63 }
  0x47   : > { %884 = vrot.lane.b32.xlu1 %v1794_v33, %s1671_s28  ;;  %v903_v5 = vsel %vm640_vm4, %v898_v2, %v902_v59  ;;  %1533 = vmatprep.subr.bf16.mxu0 %v1624_v6 }
  0x48   : > { %876 = vrot.lane.b32.xlu0 %v1798_v34, %s1671_s28  ;;  %1556 = vmatprep.subr.bf16.mxu1 %v1624_v6 }
  0x4a   : > { %1534 = vmatpush3.bf16.msra.mxu0 %v1624_v6  ;;  %1561 = vmatpush3.bf16.msra.mxu1 %v1624_v6 }
  0x4b   : > { %886 = vrot.lane.b32.xlu1 %v1960_v24, %s1671_s28  ;;  %1563 = vmatprep.subr.msk.bf16.mxu0 %vm1129_vm5, %v1625_v11 }
  0x4c   : > { %878 = vrot.lane.b32.xlu0 %v1986_v39, %s1671_s28  ;;  %1564 = vmatprep.subr.msk.bf16.mxu1 %vm1129_vm5, %v1625_v11 }
  0x4e   : > { %1536 = vmatpush3.bf16.msra.mxu0 %v1131_v12  ;;  %1562 = vmatpush3.bf16.msra.mxu1 %v1131_v12 }
  0x4f   : > { %912 = vrot.lane.b32.xlu1 %v1921_v44, %s1672_s15 }
  0x50   : > { %904 = vrot.lane.b32.xlu0 %v1895_v20, %s1672_s15 }
  0x53   : > { %914 = vrot.lane.b32.xlu1 %v736_v7, %s1672_s15 }
  0x54   : > { %906 = vrot.lane.b32.xlu0 %v688_v13, %s1672_s15 }
  0x57   : > { %932 = vrot.lane.b32.xlu1 %v1952_v17, %s1673_s22 }
  0x58   : > { %924 = vrot.lane.b32.xlu0 %v1978_v35, %s1673_s22 }
  0x5b   : > { %749 = vrot.lane.b32.xlu1 %v1921_v44, %s1668_s19 }
  0x5c   : > { %741 = vrot.lane.b32.xlu0 %v1895_v20, %s1668_s19 }
  0x5f   : > { %934 = vrot.lane.b32.xlu1 %v793_v19, %s1673_s22 }
  0x60   : > { %926 = vrot.lane.b32.xlu0 %v781_v26, %s1673_s22 }
  0x63   : > { %751 = vrot.lane.b32.xlu1 %v736_v7, %s1668_s19 }
  0x64   : > { %743 = vrot.lane.b32.xlu0 %v688_v13, %s1668_s19 }
  0x67   : > { %806 = vrot.lane.b32.xlu1 %v1952_v17, %s1667_s9 }
  0x68   : > { %798 = vrot.lane.b32.xlu0 %v1978_v35, %s1667_s9 }
  0x6b   : > { %808 = vrot.lane.b32.xlu1 %v793_v19, %s1667_s9 }
  0x6c   : > { %800 = vrot.lane.b32.xlu0 %v781_v26, %s1667_s9 }
  0x6f   : > { %823 = vrot.lane.b32.xlu1 %v1960_v24, %s1666_s16 }
  0x70   : > { %815 = vrot.lane.b32.xlu0 %v1986_v39, %s1666_s16 }
  0x73   : > { %825 = vrot.lane.b32.xlu1 %v1938_v60, %s1666_s16 }
  0x74   : > { %817 = vrot.lane.b32.xlu0 %v1805_v37, %s1666_s16 }
  0x77   : > { %851 = vrot.lane.b32.xlu1 %v736_v7, %s1669_s29 }
  0x78   : > { %843 = vrot.lane.b32.xlu0 %v688_v13, %s1669_s29 }
  0x7b   : > { %853 = vrot.lane.b32.xlu1 %v1964_v27, %s1669_s29 }
  0x7c   : > { %845 = vrot.lane.b32.xlu0 %v1855_v61, %s1669_s29 }
  0x7f   : > { %871 = vrot.lane.b32.xlu1 %v793_v19, %s1670_s10 }
  0x80   : > { %863 = vrot.lane.b32.xlu0 %v781_v26, %s1670_s10 }
  0x83   : > { %873 = vrot.lane.b32.xlu1 %v1949_v15, %s1670_s10 }
  0x84   : > { %865 = vrot.lane.b32.xlu0 %v1827_v47, %s1670_s10  ;;  %s1484_s10 = sshll.u32 %s1749_s8, 3 }
  0x87   : > { %888 = vrot.lane.b32.xlu1 %v1938_v60, %s1671_s28 }
  0x88   : > { %880 = vrot.lane.b32.xlu0 %v1805_v37, %s1671_s28 }
  0x8b   : > { %890 = vrot.lane.b32.xlu1 %v1995_v50, %s1671_s28 }
  0x8c   : > { %882 = vrot.lane.b32.xlu0 %v1775_v23, %s1671_s28  ;;  %s2200_s28 = scalar_lea.vmem %s2283_s6, %s1484_s10 }
  0x8f   : > { %916 = vrot.lane.b32.xlu1 %v1964_v27, %s1672_s15 }
  0x90   : > { %908 = vrot.lane.b32.xlu0 %v1855_v61, %s1672_s15 }
  0x91   : > { %v820_v20 = vpop.permute.xlu1 %819 }
  0x92   : > { %v812_v44 = vpop.permute.xlu0 %811 }
  0x93   : > { %918 = vrot.lane.b32.xlu1 %v903_v5, %s1672_s15 }
  0x94   : > { %910 = vrot.lane.b32.xlu0 %v1890_v16, %s1672_s15 }
  0x95   : > { %v822_v60 = vpop.permute.xlu1 %821 }
  0x96   : > { %v2089_v17 = vpop.permute.xlu0 %813 }
  0x97   : > { %936 = vrot.lane.b32.xlu1 %v1949_v15, %s1673_s22 }
  0x98   : > { %928 = vrot.lane.b32.xlu0 %v1827_v47, %s1673_s22 }
  0x99   : > { %v803_v27 = vpop.permute.xlu1 %802 }
  0x9a   : > { %v797_v28 = vpop.permute.xlu0 %796 }
  0x9b   : > { %938 = vrot.lane.b32.xlu1 %v2008_v62, %s1673_s22 }
  0x9c   : > { %930 = vrot.lane.b32.xlu0 %v1841_v54, %s1673_s22 }
  0x9d   : > { %v805_v29 = vpop.permute.xlu1 %804 }
  0x9e   : > { %v746_v30 = vpop.permute.xlu0 %745 }
  0x9f   : > { %v950_v45 = vsel %vm940_vm6, %v1805_v37, %v746_v30 }
  0xa0   : > { %v967_v50 = vsel %vm957_vm7, %v950_v45, %v803_v27 }
  0xa1   : > { %v740_v61 = vpop.permute.xlu1 %739  ;;  %v984_v55 = vsel %vm974_vm8, %v967_v50, %v820_v20 }
  0xa2   : > { %v840_v43 = vpop.permute.xlu0 %839 }
  0xa5   : > { %v748_v52 = vpop.permute.xlu1 %747 }
  0xa6   : > { %v842_v15 = vpop.permute.xlu0 %841  ;;  %v952_v37 = vsel %vm940_vm6, %v1775_v23, %v748_v52  ;;  %v944_v23 = vsel %vm940_vm6, %v1782_v25, %v740_v61 }
  0xa7   : > { %v969_v1 = vsel %vm957_vm7, %v952_v37, %v805_v29  ;;  %v961_v7 = vsel %vm957_vm7, %v944_v23, %v797_v28 }
  0xa8   : > { %v986_v4 = vsel %vm974_vm8, %v969_v1, %v822_v60  ;;  %v978_v18 = vsel %vm974_vm8, %v961_v7, %v2089_v17 }
  0xa9   : > { %v848_v31 = vpop.permute.xlu1 %847  ;;  %v995_v20 = vsel %vm991_vm10, %v978_v18, %v842_v15 }
  0xaa   : > { %v795_v16 = vpop.permute.xlu0 %794  ;;  %v1001_v57 = vsel %vm991_vm10, %v984_v55, %v848_v31 }
  0xad   : > { %v850_v32 = vpop.permute.xlu1 %849 }
  0xae   : > { %v860_v36 = vpop.permute.xlu0 %859  ;;  %v1003_v8 = vsel %vm991_vm10, %v986_v4, %v850_v32 }
  0xb1   : > { %v868_v35 = vpop.permute.xlu1 %867 }
  0xb2   : > { %v738_v40 = vpop.permute.xlu0 %737  ;;  %v1018_v58 = vsel %vm1008_vm9, %v1001_v57, %v868_v35 }
  0xb3   : > { %v942_v46 = vsel %vm940_vm6, %v1926_v48, %v738_v40 }
  0xb4   : > { %v959_v53 = vsel %vm957_vm7, %v942_v46, %v795_v16 }
  0xb5   : > { %v870_v38 = vpop.permute.xlu1 %869  ;;  %v976_v48 = vsel %vm974_vm8, %v959_v53, %v812_v44 }
  0xb6   : > { %v862_v42 = vpop.permute.xlu0 %861  ;;  %v993_v2 = vsel %vm991_vm10, %v976_v48, %v840_v43  ;;  %v1020_v11 = vsel %vm1008_vm9, %v1003_v8, %v870_v38 }
  0xb7   : > { %v1010_v5 = vsel %vm1008_vm9, %v993_v2, %v860_v36  ;;  %v1012_v44 = vsel %vm1008_vm9, %v995_v20, %v862_v42 }
  0xb9   : > { %v885_v41 = vpop.permute.xlu1 %884 }
  0xba   : > { %v877_v54 = vpop.permute.xlu0 %876  ;;  %v1035_v62 = vsel %vm1025_vm11, %v1018_v58, %v885_v41 }
  0xbb   : > { %v1027_v9 = vsel %vm1025_vm11, %v1010_v5, %v877_v54 }
  0xbd   : > { %v887_v47 = vpop.permute.xlu1 %886 }
  0xbe   : > { %v879_v51 = vpop.permute.xlu0 %878  ;;  %v1037_v25 = vsel %vm1025_vm11, %v1020_v11, %v887_v47 }
  0xbf   : > { %v1029_v27 = vsel %vm1025_vm11, %v1012_v44, %v879_v51 }
  0xc1   : > { %v913_v49 = vpop.permute.xlu1 %912 }
  0xc2   : > { %v905_v59 = vpop.permute.xlu0 %904  ;;  %v1052_v63 = vsel %vm1042_vm12, %v1035_v62, %v913_v49 }
  0xc3   : > { %v1044_v12 = vsel %vm1042_vm12, %v1027_v9, %v905_v59 }
  0xc5   : > { %v915_v56 = vpop.permute.xlu1 %914 }
  0xc6   : > { %v907_v3 = vpop.permute.xlu0 %906  ;;  %v1054_v19 = vsel %vm1042_vm12, %v1037_v25, %v915_v56 }
  0xc7   : > { %v1046_v28 = vsel %vm1042_vm12, %v1029_v27, %v907_v3 }
  0xc9   : > { %v933_v0 = vpop.permute.xlu1 %932 }
  0xca   : > { %v1069_v10 = vsel %vm1059_vm13, %v1052_v63, %v933_v0  ;;  %v925_v13 = vpop.permute.xlu0 %924 }
  0xcb   : > { %1545 = vmatprep.mubr.msk.bf16.mxu1 %vm1112_vm14, %v1069_v10  ;;  %v1061_v14 = vsel %vm1059_vm13, %v1044_v12, %v925_v13 }
  0xcc   : > { %1537 = vmatprep.mubr.msk.bf16.mxu0 %vm1112_vm14, %v1061_v14 }
  0xcd   : > { %v750_v6 = vpop.permute.xlu1 %749 }
  0xce   : > { %v742_v26 = vpop.permute.xlu0 %741  ;;  %v954_v53 = vsel %vm940_vm6, %v1794_v33, %v750_v6 }
  0xcf   : > { %v946_v33 = vsel %vm940_vm6, %v1798_v34, %v742_v26 }
  0xd1   : > { %v935_v21 = vpop.permute.xlu1 %934 }
  0xd2   : > { %v1071_v22 = vsel %vm1059_vm13, %v1054_v19, %v935_v21  ;;  %v927_v17 = vpop.permute.xlu0 %926 }
  0xd3   : > { %1546 = vmatmul.mubr.msk.bf16.vlgmr.msra.gmra.mrb[0].mxu1 %vm1112_vm14, %v1071_v22  ;;  %v1063_v29 = vsel %vm1059_vm13, %v1046_v28, %v927_v17  ;;  %v2185_v28 = vld [vmem:[%s2281_s4] ss:$0 sm:$0xff] }
  0xd4   : > { %1538 = vmatmul.mubr.msk.bf16.vlgmr.msra.gmra.mrb[0].mxu0 %vm1112_vm14, %v1063_v29  ;;  %v2190_v17 = vld [vmem:[%s2282_s5] ss:$0 sm:$0xff] }
  0xd5   : > { %v752_v60 = vpop.permute.xlu1 %751 }
  0xd6   : > { %v744_v61 = vpop.permute.xlu0 %743  ;;  %v956_v58 = vsel %vm940_vm6, %v1960_v24, %v752_v60 }
  0xd7   : > { %v948_v8 = vsel %vm940_vm6, %v1986_v39, %v744_v61 }
  0xd9   : > { %v807_v30 = vpop.permute.xlu1 %806 }
  0xda   : > { %v799_v52 = vpop.permute.xlu0 %798  ;;  %v971_v56 = vsel %vm957_vm7, %v954_v53, %v807_v30 }
  0xdb   : > { %v963_v23 = vsel %vm957_vm7, %v946_v33, %v799_v52 }
  0xdd   : > { %v809_v43 = vpop.permute.xlu1 %808 }
  0xde   : > { %v801_v32 = vpop.permute.xlu0 %800  ;;  %v973_v63 = vsel %vm957_vm7, %v956_v58, %v809_v43 }
  0xdf   : > { %v965_v13 = vsel %vm957_vm7, %v948_v8, %v801_v32 }
  0xe1   : > { %v824_v31 = vpop.permute.xlu1 %823 }
  0xe2   : > { %v816_v15 = vpop.permute.xlu0 %815  ;;  %v988_v57 = vsel %vm974_vm8, %v971_v56, %v824_v31 }
  0xe3   : > { %v980_v4 = vsel %vm974_vm8, %v963_v23, %v816_v15 }
  0xe5   : > { %v826_v16 = vpop.permute.xlu1 %825 }
  0xe6   : > { %v818_v36 = vpop.permute.xlu0 %817  ;;  %v990_v1 = vsel %vm974_vm8, %v973_v63, %v826_v16 }
  0xe7   : > { %v982_v18 = vsel %vm974_vm8, %v965_v13, %v818_v36 }
  0xe9   : > { %v852_v35 = vpop.permute.xlu1 %851 }
  0xea   : > { %v844_v40 = vpop.permute.xlu0 %843  ;;  %v1005_v48 = vsel %vm991_vm10, %v988_v57, %v852_v35 }
  0xeb   : > { %v997_v34 = vsel %vm991_vm10, %v980_v4, %v844_v40 }
  0xed   : > { %v854_v38 = vpop.permute.xlu1 %853 }
  0xee   : > { %v846_v42 = vpop.permute.xlu0 %845  ;;  %v1007_v3 = vsel %vm991_vm10, %v990_v1, %v854_v38 }
  0xef   : > { %v999_v39 = vsel %vm991_vm10, %v982_v18, %v846_v42 }
  0xf1   : > { %v872_v41 = vpop.permute.xlu1 %871 }
  0xf2   : > { %v864_v45 = vpop.permute.xlu0 %863  ;;  %v1022_v59 = vsel %vm1008_vm9, %v1005_v48, %v872_v41 }
  0xf3   : > { %v1014_v9 = vsel %vm1008_vm9, %v997_v34, %v864_v45 }
  0xf5   : > { %v874_v47 = vpop.permute.xlu1 %873 }
  0xf6   : > { %v866_v46 = vpop.permute.xlu0 %865  ;;  %v1024_v5 = vsel %vm1008_vm9, %v1007_v3, %v874_v47 }
  0xf7   : > { %v1016_v26 = vsel %vm1008_vm9, %v999_v39, %v866_v46 }
  0xf9   : > { %v889_v54 = vpop.permute.xlu1 %888 }
  0xfa   : > { %v881_v50 = vpop.permute.xlu0 %880  ;;  %v1039_v0 = vsel %vm1025_vm11, %v1022_v59, %v889_v54 }
  0xfb   : > { %v1031_v25 = vsel %vm1025_vm11, %v1014_v9, %v881_v50 }
  0xfd   : > { %v891_v49 = vpop.permute.xlu1 %890 }
  0xfe   : > { %v883_v55 = vpop.permute.xlu0 %882  ;;  %v1041_v7 = vsel %vm1025_vm11, %v1024_v5, %v891_v49 }
  0xff   : > { %v1033_v20 = vsel %vm1025_vm11, %v1016_v26, %v883_v55 }
 0x101   : > { %v917_v51 = vpop.permute.xlu1 %916 }
 0x102   : > { %v909_v62 = vpop.permute.xlu0 %908  ;;  %v1056_v2 = vsel %vm1042_vm12, %v1039_v0, %v917_v51 }
 0x103   : > { %v1048_v19 = vsel %vm1042_vm12, %v1031_v25, %v909_v62 }
 0x105   : > { %v919_v37 = vpop.permute.xlu1 %918 }
 0x106   : > { %v911_v6 = vpop.permute.xlu0 %910  ;;  %v1058_v11 = vsel %vm1042_vm12, %v1041_v7, %v919_v37 }
 0x107   : > { %v1050_v44 = vsel %vm1042_vm12, %v1033_v20, %v911_v6 }
 0x109   : > { %v937_v10 = vpop.permute.xlu1 %936 }
 0x10a   : > { %v1073_v24 = vsel %vm1059_vm13, %v1056_v2, %v937_v10  ;;  %v929_v21 = vpop.permute.xlu0 %928 }
 0x10b   : > { %1549 = vmatprep.mubr.msk.bf16.mxu1 %vm1112_vm14, %v1073_v24  ;;  %v1065_v22 = vsel %vm1059_vm13, %v1048_v19, %v929_v21 }
 0x10c   : > { %1541 = vmatprep.mubr.msk.bf16.mxu0 %vm1112_vm14, %v1065_v22 }
 0x10d   : > { %v939_v12 = vpop.permute.xlu1 %938 }
 0x10e   : > { %v1075_v14 = vsel %vm1059_vm13, %v1058_v11, %v939_v12  ;;  %v931_v60 = vpop.permute.xlu0 %930 }
 0x10f   : > { %1550 = vmatmul.mubr.msk.bf16.gmra.mrb[4].mxu1 %vm1112_vm14, %v1075_v14  ;;  %v1067_v27 = vsel %vm1059_vm13, %v1050_v44, %v931_v60 }
 0x110   : > { %1542 = vmatmul.mubr.msk.bf16.gmra.mrb[4].mxu0 %vm1112_vm14, %v1067_v27 }
 0x1a6   : > { %v1547_v29 = vpop.f32.mrb[0].mxu1 }
 0x1a7   : > { %v1247_v30 = vmul.f32 %v1547_v29, %v2185_v28  ;;  %v1199_v61 = vpop.f32.mrb[1].mxu1  ;;  %v1539_v40 = vpop.f32.mrb[0].mxu0 }
 0x1a8   : > { %v1245_v43 = vmul.f32 %v2185_v28, %v1199_v61  ;;  %v1548_v52 = vpop.f32.mrb[2].mxu1  ;;  %v1239_v47 = vmul.f32 %v1539_v40, %v2185_v28  ;;  %v1167_v45 = vpop.f32.mrb[1].mxu0 }
 0x1a9   : > { %v1270_v31 = vadd.f32 %v2190_v17, %v1247_v30  ;;  %v1248_v32 = vmul.f32 %v1548_v52, %v2185_v28  ;;  %v1202_v16 = vpop.f32.mrb[3].mxu1  ;;  %v1237_v46 = vmul.f32 %v2185_v28, %v1167_v45  ;;  %v1540_v49 = vpop.f32.mrb[2].mxu0 }
 0x1aa   : > { %v1268_v15 = vadd.f32 %v2190_v17, %v1245_v43  ;;  %v1246_v35 = vmul.f32 %v2185_v28, %v1202_v16  ;;  %v1262_v51 = vadd.f32 %v2190_v17, %v1239_v47  ;;  %v1240_v53 = vmul.f32 %v1540_v49, %v2185_v28  ;;  %v1170_v55 = vpop.f32.mrb[3].mxu0 }
 0x1ab   : > { %v1286_v36 = vmax.f32 %v1270_v31, 0.0  ;;  %v1271_v38 = vadd.f32 %v2190_v17, %v1248_v32  ;;  %v1260_v56 = vadd.f32 %v2190_v17, %v1237_v46  ;;  %v1238_v57 = vmul.f32 %v2185_v28, %v1170_v55 }
 0x1ac   : > { %v1284_v41 = vmax.f32 %v1268_v15, 0.0  ;;  %v1269_v42 = vadd.f32 %v2190_v17, %v1246_v35  ;;  %v1278_v37 = vmax.f32 %v1262_v51, 0.0  ;;  %v1263_v48 = vadd.f32 %v2190_v17, %v1240_v53 }
 0x1ad   : > { %1302 = vst.msk [vmem:[%s2200_s28 + $0x50] sm:$0xff] %vm940_vm6, %v1286_v36  ;;  %v1287_v54 = vmax.f32 %v1271_v38, 0.0  ;;  %v1276_v58 = vmax.f32 %v1260_v56, 0.0  ;;  %v1261_v59 = vadd.f32 %v2190_v17, %v1238_v57 }
 0x1ae   : > { %1300 = vst.msk [vmem:[%s2200_s28 + $0x40] sm:$0xff] %vm940_vm6, %v1284_v41  ;;  %v1285_v50 = vmax.f32 %v1269_v42, 0.0  ;;  %1294 = vst.msk [vmem:[%s2200_s28 + $0x10] sm:$0xff] %vm940_vm6, %v1278_v37  ;;  %v1279_v62 = vmax.f32 %v1263_v48, 0.0 }
 0x1af   : > { %1303 = vst.msk [vmem:[%s2200_s28 + $0x58] sm:$0xff] %vm940_vm6, %v1287_v54  ;;  %1292 = vst.msk [vmem:[%s2200_s28] sm:$0xff] %vm940_vm6, %v1276_v58  ;;  %v1277_v63 = vmax.f32 %v1261_v59, 0.0 }
 0x1b0   : > { %1301 = vst.msk [vmem:[%s2200_s28 + $0x48] sm:$0xff] %vm940_vm6, %v1285_v50  ;;  %1295 = vst.msk [vmem:[%s2200_s28 + $0x18] sm:$0xff] %vm940_vm6, %v1279_v62 }
 0x1b1   : > { %1293 = vst.msk [vmem:[%s2200_s28 + $0x8] sm:$0xff] %vm940_vm6, %v1277_v63 }
 0x1e2   : > { %v1551_v0 = vpop.f32.mrb[4].mxu1 }
 0x1e3   : > { %v1251_v33 = vmul.f32 %v1551_v0, %v2185_v28  ;;  %v1215_v1 = vpop.f32.mrb[5].mxu1  ;;  %v1543_v7 = vpop.f32.mrb[4].mxu0 }
 0x1e4   : > { %v1249_v2 = vmul.f32 %v2185_v28, %v1215_v1  ;;  %v1552_v10 = vpop.f32.mrb[6].mxu1  ;;  %v1243_v11 = vmul.f32 %v1543_v7, %v2185_v28  ;;  %v1183_v12 = vpop.f32.mrb[5].mxu0 }
 0x1e5   : > { %v1274_v23 = vadd.f32 %v2190_v17, %v1251_v33  ;;  %v1252_v3 = vmul.f32 %v1552_v10, %v2185_v28  ;;  %v1218_v24 = vpop.f32.mrb[7].mxu1  ;;  %v1241_v25 = vmul.f32 %v2185_v28, %v1183_v12  ;;  %v1544_v14 = vpop.f32.mrb[6].mxu0 }
 0x1e6   : > { %v1272_v4 = vadd.f32 %v2190_v17, %v1249_v2  ;;  %v1250_v5 = vmul.f32 %v2185_v28, %v1218_v24  ;;  %v1266_v19 = vadd.f32 %v2190_v17, %v1243_v11  ;;  %v1244_v21 = vmul.f32 %v1544_v14, %v2185_v28  ;;  %v1186_v39 = vpop.f32.mrb[7].mxu0 }
 0x1e7   : > { %v1290_v6 = vmax.f32 %v1274_v23, 0.0  ;;  %v1275_v34 = vadd.f32 %v2190_v17, %v1252_v3  ;;  %v1264_v22 = vadd.f32 %v2190_v17, %v1241_v25  ;;  %v1242_v26 = vmul.f32 %v2185_v28, %v1186_v39 }
 0x1e8   : > { %v1288_v8 = vmax.f32 %v1272_v4, 0.0  ;;  %v1273_v9 = vadd.f32 %v2190_v17, %v1250_v5  ;;  %v1282_v20 = vmax.f32 %v1266_v19, 0.0  ;;  %v1267_v44 = vadd.f32 %v2190_v17, %v1244_v21 }
 0x1e9   : > { %1306 = vst.msk [vmem:[%s2200_s28 + $0x70] sm:$0xff] %vm940_vm6, %v1290_v6  ;;  %v1291_v13 = vmax.f32 %v1275_v34, 0.0  ;;  %v1280_v60 = vmax.f32 %v1264_v22, 0.0  ;;  %v1265_v27 = vadd.f32 %v2190_v17, %v1242_v26 }
 0x1ea   : > { %1304 = vst.msk [vmem:[%s2200_s28 + $0x60] sm:$0xff] %vm940_vm6, %v1288_v8  ;;  %v1289_v18 = vmax.f32 %v1273_v9, 0.0  ;;  %1298 = vst.msk [vmem:[%s2200_s28 + $0x30] sm:$0xff] %vm940_vm6, %v1282_v20  ;;  %v1283_v29 = vmax.f32 %v1267_v44, 0.0 }
 0x1eb   : > { %1307 = vst.msk [vmem:[%s2200_s28 + $0x78] sm:$0xff] %vm940_vm6, %v1291_v13  ;;  %1296 = vst.msk [vmem:[%s2200_s28 + $0x20] sm:$0xff] %vm940_vm6, %v1280_v60  ;;  %v1281_v30 = vmax.f32 %v1265_v27, 0.0 }
 0x1ec   : > { %1305 = vst.msk [vmem:[%s2200_s28 + $0x68] sm:$0xff] %vm940_vm6, %v1289_v18  ;;  %1299 = vst.msk [vmem:[%s2200_s28 + $0x38] sm:$0xff] %vm940_vm6, %v1283_v29 }
 0x1ed   : > { %1297 = vst.msk [vmem:[%s2200_s28 + $0x28] sm:$0xff] %vm940_vm6, %v1281_v30 }
 0x1ee PF: > { %s16_s25 = sadd.s32 1, %s1664_s25   ;;  %s2287_s21 = smov %s1656_s23 }
 0x1ef   : > { %p13_p0 = scmp.ge.s32.totalorder %s16_s25, 6   ;;  %s2288_s22 = smov %s1660_s24 }
 0x1f0   : > { %s2289_s23 = smov %s2292_s26  ;;  %s2290_s24 = smov %s2296_s27 }
 0x1f1   :  { %15 = sbr.rel (!%p13_p0) target bundleno = 3 (0x3), region = 80 }

// kernel: upsampling_concat_forward.2
= control target key start
LH: loop header
LB: loop body
LE: loop exit
PB: predicated region body
PF: predicated region fallthrough
CT: control target
= control target key end

     0   :  { %s2292_s30 = smov 0   ;;  %s2294_s10 = smov 0   ;;  %s2939_s0 = inlined_call_operand.vmem [shape: bf16[2,16,16,4], index: 0, kind: input, shape index: {}, may-alias: {0,1,2}]   ;;  %s2940_s1 = inlined_call_operand.vmem [shape: bf16[2,16,16,4], index: 1, kind: input, shape index: {}, may-alias: {0,1,2}]   ;;  %s2941_s2 = inlined_call_operand.vmem [shape: bf16[2,16,16,4], index: 2, kind: input, shape index: {}, may-alias: {0,1,2}]   ;;  %s2942_s3 = inlined_call_operand.vmem [shape: bf16[2,16,16,4], index: 3, kind: input, shape index: {}, may-alias: {3,4,5}]   ;;  %s2943_s4 = inlined_call_operand.vmem [shape: bf16[2,16,16,4], index: 4, kind: input, shape index: {}, may-alias: {3,4,5}]   ;;  %s2944_s5 = inlined_call_operand.vmem [shape: bf16[2,16,16,4], index: 5, kind: input, shape index: {}, may-alias: {3,4,5}]   ;;  %s2945_s6 = inlined_call_operand.vmem [shape: bf16[72,8], index: 6, kind: input, shape index: {}]   ;;  %s2946_s7 = inlined_call_operand.vmem [shape: f32[1,8], index: 7, kind: input, shape index: {}]   ;;  %s2947_s8 = inlined_call_operand.vmem [shape: f32[1,8], index: 8, kind: input, shape index: {}]   ;;  %s2948_s9 = inlined_call_operand.vmem [shape: bf16[2,16,16,8], index: 9, kind: output, shape index: {}]  }
   0x1   :  { %2949 = sst [smem:[#allocation4_spill]] %s2939_s0  ;;  %s2296_s11 = smov 0  }
   0x2   :  { %2950 = sst [smem:[#allocation5_spill]] %s2942_s3  ;;  %s2298_s12 = smov 0  }
   0x3   :  { %s2300_s13 = smov 0  }
   0x4 LB: > { %s28_s14 = sadd.s32 1, %s2223_s11  ;;  %s31_s15 = sadd.s32 1, %s2227_s12  ;;  %s2231_s13 = sphi %s2300_s13, %s19_s13   ;;  %s2227_s12 = sphi %s2298_s12, %s2963_s12   ;;  %s2223_s11 = sphi %s2296_s11, %s2962_s11   ;;  %s2219_s10 = sphi %s2294_s10, %s2961_s10   ;;  %s2215_s30 = sphi %s2292_s30, %s2960_s30  }
   0x5   : > { %p29_p0 = scmp.ge.s32.totalorder %s28_s14, 2  ;;  %p1952_p1 = scmp.ge.s32.totalorder %s2231_s13, 1 }
   0x6   : > { %p455_p2 = scmp.lt.s32.totalorder %s2231_s13, 5 }
   0x7   : > { %s2965_s14 = smov (%p29_p0, %s28_s14), 0  ;;  %s2967_s15 = smov (!%p29_p0, %s31_s15), %s2227_s12 }
   0x8   : > { %2951 = sst [smem:[#allocation2_spill]] %s2965_s14  ;;  %p456_p3 = pnand %p1952_p1, %p455_p2 }
   0x9   : > { %p33_p4 = scmp.ge.s32.totalorder %s2967_s15, 2  ;;  %s1953_s16 = sshll.u32 (!%p456_p3), %s2215_s30, 3  ;;  %vm757_vm0 = vcmask (!%p456_p3), 31744   ;;  %vm976_vm1 = vcmask (!%p456_p3), 1040384   ;;  %vm977_vm2 = vsmask.f32 (!%p456_p3), 256 }
   0xa   : > { %459 = sbr.rel (%p456_p3) target bundleno = 616 (0x268), region = 56  ;;  %p564_p5 = scmp.lt.s32.totalorder (!%p456_p3), %s2219_s10, 1  ;;  %vm2393_vm3 = vmand (!%p456_p3), %vm976_vm1, %vm977_vm2  ;;  %vm1128_vm4 = vcmask (!%p456_p3), 1046528   ;;  %vm999_vm5 = vsmask.f32 (!%p456_p3), 7424  ;;  %vm1488_vm6 = vcmask (!%p456_p3), 1043456  }
   0xb   : > { %s2969_s15 = smov (%p33_p4, %s2967_s15), 0  ;;  %p566_p6 = scmp.lt.s32.totalorder (!%p456_p3), %s1953_s16, 15  ;;  %vm1299_vm7 = vcmask (!%p456_p3), 64512   ;;  %vm1316_vm8 = vcmask (!%p456_p3), 130048   ;;  %vm1333_vm9 = vcmask (!%p456_p3), 195584   ;;  %vm1350_vm10 = vcmask (!%p456_p3), 261120  }
   0xc   : > { %2952 = sst [smem:[#allocation3_spill]] %s2969_s15  ;;  %s1958_s19 = sadd.s32 (!%p456_p3), 4294967295, %s1953_s16  ;;  %vm1367_vm11 = vcmask (!%p456_p3), 326656   ;;  %vm1384_vm12 = vcmask (!%p456_p3), 392192   ;;  %vm1401_vm13 = vcmask (!%p456_p3), 457728   ;;  %vm1418_vm14 = vcmask (!%p456_p3), 523264  }
   0xd   : > { %p576_p7 = scmp.gt.s32.totalorder (!%p456_p3), %s1958_s19, 0  ;;  %s2953_s3 = sld [smem:[#allocation5_spill]] (!%p456_p3)  ;;  %vm1471_vm15 = vcmask (!%p456_p3), 588800  }
   0xe   : > { %p1959_p8 = scmp.lt.s32.totalorder (!%p456_p3), %s1958_s19, 15  ;;  %s592_s26 = sadd.s32 (!%p456_p3), 8, %s1953_s16 }
   0xf   : > { %s2233_s27 = smov (!%p456_p3), 4   ;;  %p2335_p9 = scmp.lt.s32.totalorder (!%p456_p3), %s592_s26, 15 }
  0x10   : > { %p665_p10 = scmp.gt.s32.totalorder (!%p456_p3), %s2215_s30, 0  ;;  %s2955_s0 = sld [smem:[#allocation4_spill]] (!%p456_p3) }
  0x11   : > { %s2971_s10 = smov (!%p564_p5, %s2219_s10), 1  ;;  %s2973_s19 = smov (!%p576_p7, %s1958_s19), 0 }
  0x12   : > { %s567_s17 = scalar_select %p566_p6, %s1953_s16, 15 }
  0x13   : > { %s2325_s18 = sshll.u32 %s2971_s10, 5  ;;  %s2975_s19 = smov (!%p1959_p8, %s2973_s19), 15 }
  0x14   : > { %s1954_s20 = sshll.u32 %s567_s17, 1  ;;  %s1964_s29 = sshll.u32 %s2975_s19, 1 }
  0x15   : > { %s570_s21 = sadd.s32 %s2325_s18, %s1954_s20  ;;  %s2977_s26 = smov (!%p2335_p9, %s592_s26), 15 }
  0x16   : > { %s2328_s22 = sshll.u32 %s570_s21, 2  ;;  %s2352_s20 = sadd.s32 %s1964_s29, %s2325_s18 }
  0x17   : > { %s617_s25 = scalar_lea.vmem %s2953_s3, %s2328_s22  ;;  %s2348_s17 = scalar_lea.vmem %s2955_s0, %s2328_s22 }
  0x18   : > { %v2172_v0 = vld [vmem:[%s617_s25 + $0x18] sm:$0xff]   ;;  %v2173_v1 = vld [vmem:[%s617_s25] sm:$0xff]   ;;  %v2174_v2 = vld [vmem:[%s617_s25 + $0x8] sm:$0xff]   ;;  %s666_s19 = scalar_select %p665_p10, 1.0, 0.0 }
  0x19   : > { %847 = vrot.lane.b32.xlu0 %v2172_v0, %s2233_s27  ;;  %841 = vrot.lane.b32.xlu1 %v2173_v1, %s2233_s27  ;;  %v2175_v3 = vld [vmem:[%s617_s25 + $0x20] sm:$0xff]   ;;  %v2177_v4 = vld [vmem:[%s617_s25 + $0x10] sm:$0xff]   ;;  %s2979_s26 = smov (!%p2335_p9, %s2977_s26), 15  ;;  %s1966_s21 = sshll.u32 %s2352_s20, 2 }
  0x1a   : > { %v2176_v5 = vld [vmem:[%s617_s25 + $0x28] sm:$0xff]   ;;  %v2178_v6 = vld [vmem:[%s617_s25 + $0x30] sm:$0xff]   ;;  %v2179_v7 = vld [vmem:[%s617_s25 + $0x38] sm:$0xff]   ;;  %s669_s23 = sshrl.u32 %s666_s19, 16  ;;  %p668_p11 = scmp.ne.f32.partialorder %s666_s19, %s666_s19 }
  0x1b   : > { %s670_s24 = sand.u32 1, %s669_s23  ;;  %s631_s25 = scalar_lea.vmem %s2943_s4, %s1966_s21  ;;  %v2181_v25 = vld [vmem:[%s2348_s17] sm:$0xff]   ;;  %v2182_v28 = vld [vmem:[%s2348_s17 + $0x8] sm:$0xff]   ;;  %v2185_v37 = vld [vmem:[%s2348_s17 + $0x10] sm:$0xff]  }
  0x1c   : > { %s671_s10 = sadd.s32 32767, %s670_s24  ;;  %s1971_s3 = sshll.u32 %s2979_s26, 1  ;;  %v737_v8 = vld [vmem:[%s631_s25] sm:$0xf]  ;;  %v738_v9 = vld [vmem:[%s631_s25 + $0x4] sm:$0xf] }
  0x1d   : > { %843 = vrot.lane.b32.xlu0 %v2174_v2, %s2233_s27  ;;  %849 = vrot.lane.b32.xlu1 %v2175_v3, %s2233_s27  ;;  %s672_s29 = sadd.s32 %s671_s10, %s666_s19  ;;  %p677_p12 = scmp.lt.s32.totalorder %s2215_s30, 1  ;;  %v2183_v31 = vld [vmem:[%s2348_s17 + $0x20] sm:$0xff]   ;;  %v2184_v40 = vld [vmem:[%s2348_s17 + $0x28] sm:$0xff]  }
  0x1e   : > { %s673_s28 = sand.u32 4294901760, %s672_s29  ;;  %s601_s24 = sadd.s32 %s1971_s3, %s2325_s18  ;;  %v2187_v50 = vld [vmem:[%s2348_s17 + $0x38] sm:$0xff]   ;;  %v2186_v56 = vld [vmem:[%s2348_s17 + $0x30] sm:$0xff]  }
  0x1f   : > { %s2981_s28 = smov (%p668_p11, %s673_s28), 2143289344  ;;  %s1973_s10 = sshll.u32 %s601_s24, 2  ;;  %v2180_v51 = vld [vmem:[%s2348_s17 + $0x18] sm:$0xff]  }
  0x20   : > { %s676_s15 = sshrl.u32 %s2981_s28, 16  ;;  %s648_s3 = scalar_lea.vmem %s2944_s5, %s1973_s10 }
  0x21   : > { %845 = vrot.lane.b32.xlu0 %v2177_v4, %s2233_s27  ;;  %851 = vrot.lane.b32.xlu1 %v2176_v5, %s2233_s27  ;;  %s707_s14 = sshll.u32 %s676_s15, 16  ;;  %v741_v14 = vld [vmem:[%s648_s3] sm:$0xf]  ;;  %v742_v15 = vld [vmem:[%s648_s3 + $0x4] sm:$0xf]  ;;  %s2235_s17 = smov 48  }
  0x22   : > { %s708_s23 = sor.u32 %s707_s14, %s676_s15  ;;  %s2236_s20 = smov 16  }
  0x23   : > { %v2368_v10 = vstv %s708_s23  ;;  %s678_s19 = scalar_select %p677_p12, 1.0, 0.0 }
  0x24   : > { %v739_v11 = vmul.bf16 %v737_v8, %v2368_v10  ;;  %v740_v12 = vmul.bf16 %v738_v9, %v2368_v10 }
  0x25   : > { %855 = vrot.lane.b32.xlu0 %v2179_v7, %s2233_s27  ;;  %853 = vrot.lane.b32.xlu1 %v2178_v6, %s2233_s27  ;;  %s681_s0 = sshrl.u32 %s678_s19, 16  ;;  %p680_p13 = scmp.ne.f32.partialorder %s678_s19, %s678_s19 }
  0x26   : > { %v2000_v13 = vcombine.low %v739_v11, %v740_v12  ;;  %s682_s29 = sand.u32 1, %s681_s0 }
  0x27   : > { %s683_s26 = sadd.s32 32767, %s682_s29  ;;  %s586_s29 = scalar_lea.vmem %s2940_s1, %s1966_s21 }
  0x28   : > { %s684_s30 = sadd.s32 %s683_s26, %s678_s19  ;;  %s603_s19 = scalar_lea.vmem %s2941_s2, %s1973_s10 }
  0x29   : > { %755 = vrot.lane.b32.xlu0 %v2000_v13, %s2233_s27  ;;  %s685_s14 = sand.u32 4294901760, %s684_s30  ;;  %v713_v20 = vld [vmem:[%s603_s19] sm:$0xf]  ;;  %v714_v21 = vld [vmem:[%s603_s19 + $0x4] sm:$0xf]  ;;  %s2237_s21 = smov 40  }
  0x2a   : > { %s2983_s14 = smov (%p680_p13, %s685_s14), 2143289344  ;;  %s2238_s26 = smov 64  }
  0x2b   : > { %s688_s15 = sshrl.u32 %s2983_s14, 16  ;;  %s2239_s14 = smov 8  }
  0x2c   : > { %s715_s18 = sshll.u32 %s688_s15, 16  ;;  %s2241_s10 = smov 56  }
  0x2d   : > { %s716_s28 = sor.u32 %s715_s18, %s688_s15  ;;  %s2865_s30 = scalar_lea.vmem %s2948_s9, %s2328_s22 }
  0x2e   : > { %v717_v16 = vstv %s716_s28  ;;  %s2240_s28 = smov 32  }
  0x2f   : > { %v743_v17 = vmul.bf16 %v741_v14, %v717_v16  ;;  %v744_v18 = vmul.bf16 %v742_v15, %v717_v16  ;;  %v719_v22 = vmul.bf16 %v717_v16, %v713_v20  ;;  %v720_v23 = vmul.bf16 %v717_v16, %v714_v21 }
  0x31   : > { %v2018_v19 = vcombine.low %v743_v17, %v744_v18  ;;  %v2380_v24 = vcombine.low %v719_v22, %v720_v23 }
  0x33   : > { %891 = vrot.lane.b32.xlu1 %v2018_v19, %s2233_s27  ;;  %s2234_s27 = smov 24  }
  0x8b   : > { %v848_v26 = vpop.permute.xlu0 %847  ;;  %v842_v27 = vpop.permute.xlu1 %841 }
  0x8c   : > { %v859_v29 = vsel %vm757_vm0, %v2181_v25, %v842_v27  ;;  %v868_v4 = vsel %vm757_vm0, %v2180_v51, %v848_v26  ;;  %v705_v25 = vld [vmem:[%s586_s29] sm:$0xf]  ;;  %v706_v26 = vld [vmem:[%s586_s29 + $0x4] sm:$0xf] }
  0x8d   : > { %v902_v30 = vshrl.u32 %v859_v29, 16  ;;  %v905_v34 = vshll.u32 %v859_v29, 16  ;;  %v920_v13 = vshrl.u32 %v868_v4, 16  ;;  %v923_v22 = vshll.u32 %v868_v4, 16 }
  0x8f   : > { %v844_v32 = vpop.permute.xlu0 %843  ;;  %v2386_v33 = vrot.slane %v902_v30, 7  ;;  %v850_v36 = vpop.permute.xlu1 %849  ;;  %v922_v21 = vrot.slane %v920_v13, 7 }
  0x90   : > { %v862_v35 = vsel %vm757_vm0, %v2182_v28, %v844_v32  ;;  %v871_v42 = vsel %vm757_vm0, %v2183_v31, %v850_v36  ;;  %v711_v31 = vmul.bf16 %v2368_v10, %v705_v25  ;;  %v712_v32 = vmul.bf16 %v2368_v10, %v706_v26 }
  0x91   : > { %v908_v38 = vshrl.u32 %v862_v35, 16  ;;  %v911_v39 = vshll.u32 %v862_v35, 16  ;;  %v907_v41 = vor.u32 %v905_v34, %v2386_v33  ;;  %v926_v45 = vshrl.u32 %v871_v42, 16 }
  0x92   : > { %v929_v54 = vshll.u32 %v871_v42, 16  ;;  %v925_v30 = vor.u32 %v923_v22, %v922_v21 }
  0x93   : > { %v2397_v44 = vrot.slane %v908_v38, 7  ;;  %v846_v46 = vpop.permute.xlu0 %845  ;;  %v852_v47 = vpop.permute.xlu1 %851  ;;  %v2401_v48 = vsel %vm2393_vm3, 0, %v907_v41  ;;  %v2407_v53 = vrot.slane %v926_v45, 7  ;;  %v2495_v45 = vsel %vm2393_vm3, %v2386_v33, 0 }
  0x94   : > { %v865_v49 = vsel %vm757_vm0, %v2185_v37, %v846_v46  ;;  %v874_v55 = vsel %vm757_vm0, %v2184_v40, %v852_v47  ;;  %1170 = vrot.lane.b32.xlu0 %v2401_v48, %s2234_s27  ;;  %v2478_v36 = vsel %vm2393_vm3, 0, %v925_v30  ;;  %v1999_v37 = vcombine.low %v711_v31, %v712_v32 }
  0x95   : > { %v913_v52 = vor.u32 %v911_v39, %v2397_v44  ;;  %v932_v57 = vshrl.u32 %v874_v55, 16  ;;  %v914_v58 = vshrl.u32 %v865_v49, 16  ;;  %v931_v60 = vor.u32 %v929_v54, %v2407_v53 }
  0x96   : > { %v917_v61 = vshll.u32 %v865_v49, 16  ;;  %v935_v0 = vshll.u32 %v874_v55, 16  ;;  %v2487_v39 = vsel %vm2393_vm3, %v922_v21, 0  ;;  %v1141_v46 = vrot.slane %v2478_v36, 1 }
  0x97   : > { %v2415_v59 = vsel %vm2393_vm3, 0, %v913_v52  ;;  %v856_v62 = vpop.permute.xlu0 %855  ;;  %v2418_v63 = vrot.slane %v932_v57, 7  ;;  %v2420_v1 = vrot.slane %v914_v58, 7  ;;  %v854_v2 = vpop.permute.xlu1 %853  ;;  %v2426_v5 = vsel %vm2393_vm3, 0, %v931_v60 }
  0x98   : > { %v880_v3 = vsel %vm757_vm0, %v2187_v50, %v856_v62  ;;  %v877_v6 = vsel %vm757_vm0, %v2186_v56, %v854_v2  ;;  %1172 = vrot.lane.b32.xlu0 %v2415_v59, %s2234_s27  ;;  %1178 = vrot.lane.b32.xlu1 %v2426_v5, %s2234_s27  ;;  %v1142_v51 = vrot.slane %v2487_v39, 1  ;;  %v1132_v52 = vrot.slane %v2401_v48, 1 }
  0x99   : > { %v944_v7 = vshrl.u32 %v880_v3, 16  ;;  %v937_v8 = vor.u32 %v935_v0, %v2418_v63  ;;  %v919_v9 = vor.u32 %v917_v61, %v2420_v1  ;;  %v947_v11 = vshll.u32 %v880_v3, 16 }
  0x9a   : > { %v938_v12 = vshrl.u32 %v877_v6, 16  ;;  %v941_v17 = vshll.u32 %v877_v6, 16  ;;  %v1133_v60 = vrot.slane %v2495_v45, 1  ;;  %v2523_v4 = vsel %vm2393_vm3, %v2407_v53, 0 }
  0x9b   : > { %v2437_v14 = vsel %vm2393_vm3, 0, %v937_v8  ;;  %v946_v15 = vrot.slane %v944_v7, 7  ;;  %v2450_v18 = vsel %vm2393_vm3, 0, %v919_v9  ;;  %v756_v10 = vpop.permute.xlu0 %755  ;;  %v2528_v9 = vsel %vm1128_vm4, %v1141_v46, %v1142_v51 }
  0x9c   : > { %v2439_v16 = vrot.slane %v938_v12, 7  ;;  %1235 = vrot.lane.b32.xlu0 %v2415_v59, %s2235_s17  ;;  %1180 = vrot.lane.b32.xlu1 %v2437_v14, %s2234_s27  ;;  %v760_v38 = vsel %vm757_vm0, %v1999_v37, %v756_v10  ;;  %v1134_v6 = vsel %vm1128_vm4, %v1132_v52, %v1133_v60  ;;  %v2564_v31 = vsel %vm2393_vm3, %v2418_v63, 0 }
  0x9d   : > { %v949_v19 = vor.u32 %v947_v11, %v946_v15  ;;  %v997_v20 = vsel %vm2393_vm3, %v946_v15, 0  ;;  %v896_v40 = vshrl.u32 %v760_v38, 16  ;;  %v899_v41 = vshll.u32 %v760_v38, 16 }
  0x9e   : > { %v943_v23 = vor.u32 %v941_v17, %v2439_v16  ;;  %v1216_v29 = vrot.slane %v997_v20, 1  ;;  %v1194_v42 = vshll.u32 %v997_v20, 16  ;;  %v1135_v20 = vrot.slane %v2415_v59, 1 }
  0x9f   : > { %v987_v27 = vsel %vm2393_vm3, 0, %v949_v19  ;;  %v898_v47 = vrot.slane %v896_v40, 7  ;;  %v1145_v19 = vrot.slane %v2523_v4, 1  ;;  %v2570_v10 = vsel %vm2393_vm3, %v2420_v1, 0 }
  0xa0   : > { %1237 = vrot.lane.b32.xlu0 %v2450_v18, %s2235_s17  ;;  %1243 = vrot.lane.b32.xlu1 %v2437_v14, %s2235_s17  ;;  %v1215_v28 = vrot.slane %v987_v27, 1  ;;  %v2467_v34 = vsel %vm2393_vm3, 0, %v943_v23  ;;  %v1189_v50 = vshll.u32 %v987_v27, 16  ;;  %v1187_v55 = vshrl.u32 %v987_v27, 16 }
  0xa1   : > { %v901_v56 = vor.u32 %v899_v41, %v898_v47  ;;  %v2506_v33 = vsel %vm2393_vm3, %v898_v47, 0  ;;  %v1196_v0 = vrot.slane %v1194_v42, 1  ;;  %v1147_v38 = vrot.slane %v2437_v14, 1 }
  0xa2   : > { %v2472_v35 = vsel %vm1128_vm4, %v1215_v28, %v1216_v29  ;;  %v1130_v61 = vrot.slane %v2506_v33, 1  ;;  %v1191_v62 = vrot.slane %v1189_v50, 1  ;;  %v1148_v63 = vrot.slane %v2564_v31, 1 }
  0xa3   : > { %v2518_v2 = vsel %vm2393_vm3, 0, %v901_v56  ;;  %v1138_v41 = vrot.slane %v2450_v18, 1  ;;  %v1139_v42 = vrot.slane %v2570_v10, 1  ;;  %v2587_v1 = vsel %vm2393_vm3, %v2439_v16, 0  ;;  %v2188_v56 = vld [vmem:[%s2945_s6] sm:$0xff]  }
  0xa4   : > { %1174 = vrot.lane.b32.xlu0 %v2450_v18, %s2234_s27  ;;  %1245 = vrot.lane.b32.xlu1 %v2467_v34, %s2235_s17  ;;  %v1129_v7 = vrot.slane %v2518_v2, 1  ;;  %v1192_v8 = vor.u32 %v1191_v62, %v1187_v55  ;;  %v1149_v46 = vsel %vm1128_vm4, %v1147_v38, %v1148_v63  ;;  %v1151_v50 = vrot.slane %v2587_v1, 1 }
  0xa5   : > { %v892_v49 = vpop.permute.xlu1 %891  ;;  %v1140_v47 = vsel %vm1128_vm4, %v1138_v41, %v1139_v42  ;;  %v1015_v43 = vshll.u32 %v2401_v48, 16  ;;  %v1051_v52 = vshll.u32 %v2478_v36, 16  ;;  %v1013_v55 = vshrl.u32 %v2401_v48, 16  ;;  %2111 = vmatprep.subr.bf16.mxu1 %v2188_v56  ;;  %2085 = vmatprep.subr.bf16.mxu0 %v2188_v56  ;;  %v2192_v42 = vld [vmem:[%s2945_s6 + $0x20] ss:$0 sps:$4 sm:$0xff]  }
  0xa6   : > { %v895_v54 = vsel %vm757_vm0, %v2380_v24, %v892_v49  ;;  %v2514_v24 = vsel %vm2393_vm3, %v2397_v44, 0  ;;  %v1144_v44 = vrot.slane %v2426_v5, 1  ;;  %v2537_v13 = vsel %vm1128_vm4, %v1129_v7, %v1130_v61  ;;  %2116 = vmatpush3.bf16.msra.mxu1 %v2188_v56  ;;  %2086 = vmatpush3.bf16.msra.mxu0 %v2188_v56 }
  0xa7   : > { %v950_v57 = vshrl.u32 %v895_v54, 16  ;;  %v953_v58 = vshll.u32 %v895_v54, 16  ;;  %v2540_v15 = vsel %vm999_vm5, %v1192_v8, %v1196_v0  ;;  %v1136_v22 = vrot.slane %v2514_v24, 1 }
  0xa8   : > { %1176 = vrot.lane.b32.xlu0 %v2478_v36, %s2234_s27  ;;  %1182 = vrot.lane.b32.xlu1 %v2467_v34, %s2234_s27  ;;  %v1150_v49 = vrot.slane %v2467_v34, 1  ;;  %v1017_v16 = vrot.slane %v1015_v43, 1  ;;  %v1020_v54 = vshll.u32 %v2495_v45, 16  ;;  %v1056_v60 = vshll.u32 %v2487_v39, 16 }
  0xa9   : > { %v952_v3 = vrot.slane %v950_v57, 7  ;;  %v1137_v32 = vsel %vm1128_vm4, %v1135_v20, %v1136_v22  ;;  %v1049_v45 = vshrl.u32 %v2478_v36, 16  ;;  %v1053_v61 = vrot.slane %v1051_v52, 1 }
  0xaa   : > { %v1152_v51 = vsel %vm1128_vm4, %v1150_v49, %v1151_v50  ;;  %v1018_v57 = vor.u32 %v1017_v16, %v1013_v55  ;;  %v1063_v62 = vshll.u32 %v2426_v5, 16  ;;  %v1022_v0 = vrot.slane %v1020_v54, 1 }
  0xab   : > { %v955_v11 = vor.u32 %v953_v58, %v952_v3  ;;  %v998_v12 = vsel %vm2393_vm3, %v952_v3, 0  ;;  %v1027_v58 = vshll.u32 %v2415_v59, 16  ;;  %v2189_v3 = vld [vmem:[%s2945_s6 + $0x8] sm:$0xff]   ;;  %v1025_v7 = vshrl.u32 %v2415_v59, 16 }
  0xac   : > { %1239 = vrot.lane.b32.xlu0 %v2478_v36, %s2235_s17  ;;  %1184 = vrot.lane.b32.xlu1 %v987_v27, %s2234_s27  ;;  %v1259_v53 = vshll.u32 %v998_v12, 16  ;;  %v1281_v17 = vrot.slane %v998_v12, 1  ;;  %v1023_v39 = vsel %vm999_vm5, %v1018_v57, %v1022_v0  ;;  %v1065_v12 = vrot.slane %v1063_v62, 1 }
  0xad   : > { %v2546_v21 = vsel %vm2393_vm3, 0, %v955_v11  ;;  %v1029_v8 = vrot.slane %v1027_v58, 1  ;;  %2112 = vmatprep.subr.bf16.mxu1 %v2189_v3  ;;  %2087 = vmatprep.subr.bf16.mxu0 %v2189_v3  ;;  %v1058_v11 = vrot.slane %v1056_v60, 1  ;;  %v1039_v22 = vshll.u32 %v2450_v18, 16 }
  0xae   : > { %v1252_v23 = vshrl.u32 %v2546_v21, 16  ;;  %v1254_v25 = vshll.u32 %v2546_v21, 16  ;;  %v1280_v26 = vrot.slane %v2546_v21, 1  ;;  %v1261_v29 = vrot.slane %v1259_v53, 1  ;;  %2117 = vmatpush3.bf16.msra.mxu1 %v2189_v3  ;;  %2088 = vmatpush3.bf16.msra.mxu0 %v2189_v3 }
  0xaf   : > { %v1068_v53 = vshll.u32 %v2523_v4, 16  ;;  %v2191_v4 = vld [vmem:[%s2945_s6 + $0x18] sm:$0xff]   ;;  %v1041_v38 = vrot.slane %v1039_v22, 1  ;;  %v1087_v43 = vshll.u32 %v2467_v34, 16  ;;  %v1092_v52 = vshll.u32 %v2587_v1, 16 }
  0xb0   : > { %1241 = vrot.lane.b32.xlu0 %v2426_v5, %s2235_s17  ;;  %1247 = vrot.lane.b32.xlu1 %v987_v27, %s2235_s17  ;;  %v2553_v27 = vsel %vm1128_vm4, %v1144_v44, %v1145_v19  ;;  %v1256_v28 = vrot.slane %v1254_v25, 1  ;;  %v2559_v30 = vsel %vm1128_vm4, %v1280_v26, %v1281_v17  ;;  %v1054_v44 = vor.u32 %v1053_v61, %v1049_v45 }
  0xb1   : > { %v1061_v17 = vshrl.u32 %v2426_v5, 16  ;;  %v1030_v19 = vor.u32 %v1029_v8, %v1025_v7  ;;  %v1075_v26 = vshll.u32 %v2437_v14, 16  ;;  %v1085_v55 = vshrl.u32 %v2467_v34, 16 }
  0xb2   : > { %v1257_v37 = vor.u32 %v1256_v28, %v1252_v23  ;;  %v2632_v23 = vsel %vm999_vm5, %v1054_v44, %v1058_v11  ;;  %v1070_v28 = vrot.slane %v1068_v53, 1  ;;  %v1089_v56 = vrot.slane %v1087_v43, 1 }
  0xb3   : > { %v1066_v25 = vor.u32 %v1065_v12, %v1061_v17  ;;  %v1077_v41 = vrot.slane %v1075_v26, 1  ;;  %v1094_v58 = vrot.slane %v1092_v52, 1  ;;  %v1003_v1 = vshll.u32 %v2518_v2, 16 }
  0xb4   : > { %1155 = vrot.lane.b32.xlu0 %v1134_v6, %s2236_s20  ;;  %1161 = vrot.lane.b32.xlu1 %v2528_v9, %s2236_s20  ;;  %v2577_v40 = vsel %vm999_vm5, %v1257_v37, %v1261_v29  ;;  %v1044_v29 = vshll.u32 %v2570_v10, 16  ;;  %v1037_v37 = vshrl.u32 %v2450_v18, 16  ;;  %v1080_v10 = vshll.u32 %v2564_v31, 16 }
  0xb5   : > { %v1071_v63 = vsel %vm999_vm5, %v1066_v25, %v1070_v28  ;;  %v1090_v57 = vor.u32 %v1089_v56, %v1085_v55  ;;  %v1008_v45 = vshll.u32 %v2506_v33, 16  ;;  %v1001_v61 = vshrl.u32 %v2518_v2, 16 }
  0xb6   : > { %v1042_v49 = vor.u32 %v1041_v38, %v1037_v37  ;;  %v1046_v50 = vrot.slane %v1044_v29, 1  ;;  %v1082_v16 = vrot.slane %v1080_v10, 1  ;;  %v1005_v62 = vrot.slane %v1003_v1, 1 }
  0xb7   : > { %v1095_v60 = vsel %vm999_vm5, %v1090_v57, %v1094_v58  ;;  %v1010_v3 = vrot.slane %v1008_v45, 1  ;;  %vm1715_vm0 = vcmask 60416  }
  0xb8   : > { %1218 = vrot.lane.b32.xlu0 %v1134_v6, %s2237_s21  ;;  %1163 = vrot.lane.b32.xlu1 %v2553_v27, %s2236_s20  ;;  %v1032_v6 = vshll.u32 %v2514_v24, 16  ;;  %v2190_v24 = vld [vmem:[%s2945_s6 + $0x10] sm:$0xff]   ;;  %v1047_v31 = vsel %vm999_vm5, %v1042_v49, %v1046_v50  ;;  %v1006_v0 = vor.u32 %v1005_v62, %v1001_v61 }
  0xb9   : > { %2113 = vmatprep.subr.bf16.mxu1 %v2190_v24  ;;  %2089 = vmatprep.subr.bf16.mxu0 %v2190_v24 }
  0xba   : > { %v1034_v20 = vrot.slane %v1032_v6, 1  ;;  %2118 = vmatpush3.bf16.msra.mxu1 %v2190_v24  ;;  %2090 = vmatpush3.bf16.msra.mxu0 %v2190_v24  ;;  %v1011_v6 = vsel %vm999_vm5, %v1006_v0, %v1010_v3 }
  0xbb   : > { %2114 = vmatprep.subr.bf16.mxu1 %v2191_v4  ;;  %2091 = vmatprep.subr.bf16.mxu0 %v2191_v4 }
  0xbc   : > { %1220 = vrot.lane.b32.xlu0 %v1137_v32, %s2237_s21  ;;  %1226 = vrot.lane.b32.xlu1 %v2553_v27, %s2237_s21 }
  0xbe   : > { %2119 = vmatpush3.bf16.msra.mxu1 %v2191_v4  ;;  %2092 = vmatpush3.bf16.msra.mxu0 %v2191_v4 }
  0xbf   : > { %2122 = vmatprep.subr.msk.bf16.mxu1 %vm1488_vm6, %v2192_v42  ;;  %2121 = vmatprep.subr.msk.bf16.mxu0 %vm1488_vm6, %v2192_v42 }
  0xc0   : > { %1283 = vrot.lane.b32.xlu0 %v1137_v32, %s2238_s26  ;;  %1228 = vrot.lane.b32.xlu1 %v1149_v46, %s2237_s21 }
  0xc4   : > { %1285 = vrot.lane.b32.xlu0 %v1140_v47, %s2238_s26  ;;  %1291 = vrot.lane.b32.xlu1 %v1149_v46, %s2238_s26 }
  0xc8   : > { %1157 = vrot.lane.b32.xlu0 %v1137_v32, %s2236_s20  ;;  %1293 = vrot.lane.b32.xlu1 %v1152_v51, %s2238_s26  ;;  %v1035_v32 = vsel %vm999_vm5, %v1030_v19, %v1034_v20 }
  0xcc   : > { %1159 = vrot.lane.b32.xlu0 %v1140_v47, %s2236_s20  ;;  %1165 = vrot.lane.b32.xlu1 %v1149_v46, %s2236_s20  ;;  %v1073_v46 = vshrl.u32 %v2437_v14, 16 }
  0xd0   : > { %1222 = vrot.lane.b32.xlu0 %v1140_v47, %s2237_s21  ;;  %1167 = vrot.lane.b32.xlu1 %v1152_v51, %s2236_s20  ;;  %v1490_v47 = vsel %vm1488_vm6, %v2192_v42, 0 }
  0xd1   : > { %2120 = vmatpush3.bf16.msra.mxu1 %v1490_v47  ;;  %2094 = vmatpush3.bf16.msra.mxu0 %v1490_v47 }
  0xd4   : > { %1224 = vrot.lane.b32.xlu0 %v2528_v9, %s2237_s21  ;;  %1230 = vrot.lane.b32.xlu1 %v1152_v51, %s2237_s21  ;;  %v1078_v51 = vor.u32 %v1077_v41, %v1073_v46 }
  0xd6   : > { %v1083_v54 = vsel %vm999_vm5, %v1078_v51, %v1082_v16 }
  0xd8   : > { %1098 = vrot.lane.b32.xlu0 %v1023_v39, %s2239_s14  ;;  %1232 = vrot.lane.b32.xlu1 %v2472_v35, %s2237_s21 }
  0xdc   : > { %1198 = vrot.lane.b32.xlu0 %v1023_v39, %s2240_s28  ;;  %1104 = vrot.lane.b32.xlu1 %v2632_v23, %s2239_s14 }
  0xe0   : > { %1200 = vrot.lane.b32.xlu0 %v1035_v32, %s2240_s28  ;;  %1106 = vrot.lane.b32.xlu1 %v1071_v63, %s2239_s14 }
  0xe4   : > { %1263 = vrot.lane.b32.xlu0 %v1035_v32, %s2241_s10  ;;  %1206 = vrot.lane.b32.xlu1 %v1071_v63, %s2240_s28 }
  0xe8   : > { %1265 = vrot.lane.b32.xlu0 %v1047_v31, %s2241_s10  ;;  %1208 = vrot.lane.b32.xlu1 %v1083_v54, %s2240_s28 }
  0xec   : > { %1100 = vrot.lane.b32.xlu0 %v1035_v32, %s2239_s14  ;;  %1271 = vrot.lane.b32.xlu1 %v1083_v54, %s2241_s10 }
  0xf0   : > { %1102 = vrot.lane.b32.xlu0 %v1047_v31, %s2239_s14  ;;  %1273 = vrot.lane.b32.xlu1 %v1095_v60, %s2241_s10 }
  0xf4   : > { %1202 = vrot.lane.b32.xlu0 %v1047_v31, %s2240_s28  ;;  %1108 = vrot.lane.b32.xlu1 %v1083_v54, %s2239_s14 }
  0xf8   : > { %1204 = vrot.lane.b32.xlu0 %v2632_v23, %s2240_s28  ;;  %1110 = vrot.lane.b32.xlu1 %v1095_v60, %s2239_s14 }
  0xfc   : > { %1153 = vrot.lane.b32.xlu0 %v2537_v13, %s2236_s20  ;;  %1210 = vrot.lane.b32.xlu1 %v1095_v60, %s2240_s28 }
 0x100   : > { %1096 = vrot.lane.b32.xlu0 %v1011_v6, %s2239_s14  ;;  %1212 = vrot.lane.b32.xlu1 %v2540_v15, %s2240_s28 }
 0x104   : > { %1267 = vrot.lane.b32.xlu0 %v2632_v23, %s2241_s10  ;;  %1249 = vrot.lane.b32.xlu1 %v2546_v21, %s2235_s17 }
 0x106   : > { %v2685_v33 = vpop.permute.xlu0 %1170 }
 0x108   : > { %1269 = vrot.lane.b32.xlu0 %v1071_v63, %s2241_s10  ;;  %1275 = vrot.lane.b32.xlu1 %v2540_v15, %s2241_s10 }
 0x10a   : > { %v1173_v13 = vpop.permute.xlu0 %1172  ;;  %v1179_v39 = vpop.permute.xlu1 %1178 }
 0x10c   : > { %1287 = vrot.lane.b32.xlu0 %v2528_v9, %s2238_s26  ;;  %1295 = vrot.lane.b32.xlu1 %v2472_v35, %s2238_s26 }
 0x10e   : > { %v2694_v7 = vpop.permute.xlu0 %1235  ;;  %v2696_v8 = vpop.permute.xlu1 %1180 }
 0x110   : > { %1289 = vrot.lane.b32.xlu0 %v2553_v27, %s2238_s26  ;;  %1277 = vrot.lane.b32.xlu1 %v2577_v40, %s2241_s10 }
 0x112   : > { %v1238_v21 = vpop.permute.xlu0 %1237  ;;  %v2702_v15 = vpop.permute.xlu1 %1243 }
 0x114   : > { %1297 = vrot.lane.b32.xlu1 %v2559_v30, %s2238_s26 }
 0x116   : > { %v2706_v9 = vpop.permute.xlu0 %1174  ;;  %v2708_v44 = vpop.permute.xlu1 %1245 }
 0x11a   : > { %v2710_v35 = vpop.permute.xlu0 %1176  ;;  %v2712_v11 = vpop.permute.xlu1 %1182 }
 0x11e   : > { %v2714_v12 = vpop.permute.xlu0 %1239  ;;  %v2716_v27 = vpop.permute.xlu1 %1184 }
 0x122   : > { %v2718_v24 = vpop.permute.xlu0 %1241  ;;  %v2720_v40 = vpop.permute.xlu1 %1247 }
 0x126   : > { %v1156_v53 = vpop.permute.xlu0 %1155  ;;  %v1162_v17 = vpop.permute.xlu1 %1161 }
 0x12a   : > { %v2722_v19 = vpop.permute.xlu0 %1218  ;;  %v1164_v30 = vpop.permute.xlu1 %1163 }
 0x12e   : > { %v1221_v20 = vpop.permute.xlu0 %1220  ;;  %v1227_v22 = vpop.permute.xlu1 %1226 }
 0x132   : > { %v2724_v23 = vpop.permute.xlu0 %1283  ;;  %v1229_v25 = vpop.permute.xlu1 %1228 }
 0x136   : > { %v1286_v26 = vpop.permute.xlu0 %1285  ;;  %v1292_v4 = vpop.permute.xlu1 %1291 }
 0x13a   : > { %v2726_v28 = vpop.permute.xlu0 %1157  ;;  %v1294_v29 = vpop.permute.xlu1 %1293 }
 0x13e   : > { %v2728_v32 = vpop.permute.xlu0 %1159  ;;  %v2730_v37 = vpop.permute.xlu1 %1165 }
 0x142   : > { %v2732_v38 = vpop.permute.xlu0 %1222  ;;  %v2734_v63 = vpop.permute.xlu1 %1167 }
 0x146   : > { %v2736_v41 = vpop.permute.xlu0 %1224  ;;  %v2738_v42 = vpop.permute.xlu1 %1230 }
 0x14a   : > { %v1099_v10 = vpop.permute.xlu0 %1098  ;;  %v2740_v46 = vpop.permute.xlu1 %1232 }
 0x14b   : > { %v1303_v47 = vsel %vm1299_vm7, %v2401_v48, %v1099_v10 }
 0x14c   : > { %v1320_v49 = vsel %vm1316_vm8, %v1303_v47, %v1156_v53 }
 0x14d   : > { %v1337_v50 = vsel %vm1333_vm9, %v1320_v49, %v1173_v13 }
 0x14e   : > { %v1199_v51 = vpop.permute.xlu0 %1198  ;;  %v1105_v43 = vpop.permute.xlu1 %1104 }
 0x14f   : > { %v1309_v16 = vsel %vm1299_vm7, %v2478_v36, %v1105_v43 }
 0x150   : > { %v1326_v48 = vsel %vm1316_vm8, %v1309_v16, %v1162_v17 }
 0x151   : > { %v1343_v1 = vsel %vm1333_vm9, %v1326_v48, %v1179_v39 }
 0x152   : > { %v1201_v31 = vpop.permute.xlu0 %1200  ;;  %v1107_v52 = vpop.permute.xlu1 %1106 }
 0x153   : > { %v1354_v54 = vsel %vm1350_vm10, %v1337_v50, %v1201_v31  ;;  %v1311_v57 = vsel %vm1299_vm7, %v2426_v5, %v1107_v52 }
 0x154   : > { %v1371_v55 = vsel %vm1367_vm11, %v1354_v54, %v1221_v20  ;;  %v1328_v36 = vsel %vm1316_vm8, %v1311_v57, %v1164_v30 }
 0x155   : > { %v1388_v56 = vsel %vm1384_vm12, %v1371_v55, %v1238_v21  ;;  %v1345_v6 = vsel %vm1333_vm9, %v1328_v36, %v2696_v8 }
 0x156   : > { %v1264_v58 = vpop.permute.xlu0 %1263  ;;  %v1207_v60 = vpop.permute.xlu1 %1206 }
 0x157   : > { %v1360_v45 = vsel %vm1350_vm10, %v1343_v1, %v1207_v60 }
 0x158   : > { %v1377_v3 = vsel %vm1367_vm11, %v1360_v45, %v1227_v22 }
 0x159   : > { %v1394_v21 = vsel %vm1384_vm12, %v1377_v3, %v2702_v15 }
 0x15a   : > { %v1266_v61 = vpop.permute.xlu0 %1265  ;;  %v1209_v62 = vpop.permute.xlu1 %1208 }
 0x15b   : > { %v1405_v0 = vsel %vm1401_vm13, %v1388_v56, %v1266_v61  ;;  %v1362_v13 = vsel %vm1350_vm10, %v1345_v6, %v1209_v62 }
 0x15c   : > { %v1422_v5 = vsel %vm1418_vm14, %v1405_v0, %v1286_v26  ;;  %v1379_v17 = vsel %vm1367_vm11, %v1362_v13, %v1229_v25 }
 0x15d   : > { %v1396_v8 = vsel %vm1384_vm12, %v1379_v17, %v2708_v44 }
 0x15e   : > { %v1101_v39 = vpop.permute.xlu0 %1100  ;;  %v1272_v53 = vpop.permute.xlu1 %1271 }
 0x15f   : > { %v1411_v30 = vsel %vm1401_vm13, %v1394_v21, %v1272_v53 }
 0x160   : > { %v1428_v20 = vsel %vm1418_vm14, %v1411_v30, %v1292_v4  ;;  %v1305_v4 = vsel %vm1299_vm7, %v2415_v59, %v1101_v39 }
 0x161   : > { %2103 = vmatprep.mubr.msk.bf16.mxu1 %vm1471_vm15, %v1428_v20  ;;  %v1322_v52 = vsel %vm1316_vm8, %v1305_v4, %v2726_v28  ;;  %v2847_v20 = vld [vmem:[%s2946_s7] ss:$0 sm:$0xff] }
 0x162   : > { %v1103_v22 = vpop.permute.xlu0 %1102  ;;  %v1274_v26 = vpop.permute.xlu1 %1273 }
 0x163   : > { %v1413_v10 = vsel %vm1401_vm13, %v1396_v8, %v1274_v26  ;;  %v1307_v55 = vsel %vm1299_vm7, %v2450_v18, %v1103_v22 }
 0x164   : > { %v1430_v47 = vsel %vm1418_vm14, %v1413_v10, %v1294_v29 }
 0x165   : > { %2104 = vmatmul.mubr.msk.bf16.vlgmr.msra.gmra.mrb[0].mxu1 %vm1471_vm15, %v1430_v47 }
 0x166   : > { %v1203_v15 = vpop.permute.xlu0 %1202  ;;  %v1109_v49 = vpop.permute.xlu1 %1108 }
 0x167   : > { %v1313_v31 = vsel %vm1299_vm7, %v2437_v14, %v1109_v49  ;;  %v1339_v14 = vsel %vm1333_vm9, %v1322_v52, %v2706_v9 }
 0x168   : > { %v1330_v48 = vsel %vm1316_vm8, %v1313_v31, %v2730_v37  ;;  %v1356_v60 = vsel %vm1350_vm10, %v1339_v14, %v1203_v15 }
 0x169   : > { %v1347_v18 = vsel %vm1333_vm9, %v1330_v48, %v2712_v11  ;;  %v1373_v36 = vsel %vm1367_vm11, %v1356_v60, %v2732_v38 }
 0x16a   : > { %v1205_v25 = vpop.permute.xlu0 %1204  ;;  %v1111_v50 = vpop.permute.xlu1 %1110 }
 0x16e   : > { %v1154_v43 = vpop.permute.xlu0 %1153  ;;  %v1211_v16 = vpop.permute.xlu1 %1210 }
 0x172   : > { %v1097_v44 = vpop.permute.xlu0 %1096  ;;  %v1213_v54 = vpop.permute.xlu1 %1212 }
 0x173   : > { %v1301_v29 = vsel %vm1299_vm7, %v2518_v2, %v1097_v44  ;;  %v1324_v2 = vsel %vm1316_vm8, %v1307_v55, %v2728_v32 }
 0x174   : > { %v1318_v56 = vsel %vm1316_vm8, %v1301_v29, %v1154_v43  ;;  %v1341_v32 = vsel %vm1333_vm9, %v1324_v2, %v2710_v35  ;;  %v1390_v35 = vsel %vm1384_vm12, %v1373_v36, %v2714_v12 }
 0x175   : > { %v1335_v59 = vsel %vm1333_vm9, %v1318_v56, %v2685_v33  ;;  %v1364_v33 = vsel %vm1350_vm10, %v1347_v18, %v1211_v16  ;;  %v1358_v61 = vsel %vm1350_vm10, %v1341_v32, %v1205_v25 }
 0x176   : > { %v1352_v28 = vsel %vm1350_vm10, %v1335_v59, %v1199_v51  ;;  %v1268_v57 = vpop.permute.xlu0 %1267  ;;  %v1250_v37 = vpop.permute.xlu1 %1249 }
 0x177   : > { %v1369_v1 = vsel %vm1367_vm11, %v1352_v28, %v2722_v19  ;;  %v1315_v19 = vsel %vm1299_vm7, %v2467_v34, %v1111_v50  ;;  %v1407_v34 = vsel %vm1401_vm13, %v1390_v35, %v1268_v57 }
 0x178   : > { %v1386_v9 = vsel %vm1384_vm12, %v1369_v1, %v2694_v7  ;;  %v1381_v7 = vsel %vm1367_vm11, %v1364_v33, %v2738_v42  ;;  %v1332_v38 = vsel %vm1316_vm8, %v1315_v19, %v2734_v63 }
 0x179   : > { %v1403_v51 = vsel %vm1401_vm13, %v1386_v9, %v1264_v58  ;;  %v1398_v58 = vsel %vm1384_vm12, %v1381_v7, %v2720_v40  ;;  %v1349_v12 = vsel %vm1333_vm9, %v1332_v38, %v2716_v27 }
 0x17a   : > { %v1270_v45 = vpop.permute.xlu0 %1269  ;;  %v1420_v11 = vsel %vm1418_vm14, %v1403_v51, %v2724_v23  ;;  %v1276_v62 = vpop.permute.xlu1 %1275  ;;  %v1375_v23 = vsel %vm1367_vm11, %v1358_v61, %v2736_v41  ;;  %v1366_v40 = vsel %vm1350_vm10, %v1349_v12, %v1213_v54 }
 0x17b   : > { %2095 = vmatprep.mubr.msk.bf16.mxu0 %vm1471_vm15, %v1420_v11  ;;  %v1415_v0 = vsel %vm1401_vm13, %v1398_v58, %v1276_v62  ;;  %v1392_v63 = vsel %vm1384_vm12, %v1375_v23, %v2718_v24  ;;  %v1383_v53 = vsel %vm1367_vm11, %v1366_v40, %v2740_v46  ;;  %v2852_v46 = vld [vmem:[%s2947_s8] ss:$0 sm:$0xff] }
 0x17c   : > { %2096 = vmatmul.mubr.msk.bf16.vlgmr.msra.gmra.mrb[0].mxu0 %vm1471_vm15, %v1422_v5  ;;  %v1409_v41 = vsel %vm1401_vm13, %v1392_v63, %v1270_v45  ;;  %v1400_v27 = vsel %vm1384_vm12, %v1383_v53, %v1250_v37 }
 0x17e   : > { %v1288_v42 = vpop.permute.xlu0 %1287  ;;  %v1296_v3 = vpop.permute.xlu1 %1295 }
 0x17f   : > { %v1424_v6 = vsel %vm1418_vm14, %v1407_v34, %v1288_v42  ;;  %v1432_v5 = vsel %vm1418_vm14, %v1415_v0, %v1296_v3 }
 0x180   : > { %2099 = vmatprep.mubr.msk.bf16.mxu0 %vm1471_vm15, %v1424_v6  ;;  %2107 = vmatprep.mubr.msk.bf16.mxu1 %vm1471_vm15, %v1432_v5 }
 0x182   : > { %v1290_v13 = vpop.permute.xlu0 %1289  ;;  %v1278_v39 = vpop.permute.xlu1 %1277 }
 0x183   : > { %v1426_v21 = vsel %vm1418_vm14, %v1409_v41, %v1290_v13  ;;  %v1417_v17 = vsel %vm1401_vm13, %v1400_v27, %v1278_v39 }
 0x184   : > { %2100 = vmatmul.mubr.msk.bf16.gmra.mrb[4].mxu0 %vm1471_vm15, %v1426_v21 }
 0x186   : > { %v1298_v24 = vpop.permute.xlu1 %1297 }
 0x187   : > { %v1434_v30 = vsel %vm1418_vm14, %v1417_v17, %v1298_v24 }
 0x188   : > { %2108 = vmatmul.mubr.msk.bf16.gmra.mrb[4].mxu1 %vm1471_vm15, %v1434_v30 }
 0x238   : > { %v2105_v22 = vpop.f32.mrb[0].mxu1 }
 0x239   : > { %v1606_v8 = vmul.f32 %v2105_v22, %v2847_v20  ;;  %v1558_v26 = vpop.f32.mrb[1].mxu1 }
 0x23a   : > { %v1604_v10 = vmul.f32 %v2847_v20, %v1558_v26  ;;  %v2106_v47 = vpop.f32.mrb[2].mxu1 }
 0x23b   : > { %v1629_v15 = vadd.f32 %v2852_v46, %v1606_v8  ;;  %v1607_v49 = vmul.f32 %v2106_v47, %v2847_v20  ;;  %v1561_v25 = vpop.f32.mrb[3].mxu1 }
 0x23c   : > { %v1627_v50 = vadd.f32 %v2852_v46, %v1604_v10  ;;  %v1605_v43 = vmul.f32 %v2847_v20, %v1561_v25 }
 0x23d   : > { %v1645_v16 = vmax.f32 %v1629_v15, 0.0  ;;  %v1630_v4 = vadd.f32 %v2852_v46, %v1607_v49 }
 0x23e   : > { %v1643_v31 = vmax.f32 %v1627_v50, 0.0  ;;  %v1628_v44 = vadd.f32 %v2852_v46, %v1605_v43 }
 0x23f   : > { %v2066_v52 = vpack.c.bf16 %v1645_v16, %v1645_v16  ;;  %v1646_v54 = vmax.f32 %v1630_v4, 0.0 }
 0x240   : > { %v2064_v29 = vpack.c.bf16 %v1643_v31, %v1643_v31  ;;  %v1644_v55 = vmax.f32 %v1628_v44, 0.0 }
 0x241   : > { %1726 = vst.msk [vmem:[%s2865_s30 + $0x28] sm:$0xf] %vm1715_vm0, %v2066_v52  ;;  %v2067_v48 = vpack.c.bf16 %v1646_v54, %v1646_v54 }
 0x242   : > { %1724 = vst.msk [vmem:[%s2865_s30 + $0x20] sm:$0xf] %vm1715_vm0, %v2064_v29  ;;  %v2065_v56 = vpack.c.bf16 %v1644_v55, %v1644_v55 }
 0x243   : > { %1727 = vst.msk [vmem:[%s2865_s30 + $0x2c] sm:$0xf] %vm1715_vm0, %v2067_v48 }
 0x244   : > { %1725 = vst.msk [vmem:[%s2865_s30 + $0x24] sm:$0xf] %vm1715_vm0, %v2065_v56 }
 0x24f   : > { %v2097_v59 = vpop.f32.mrb[0].mxu0 }
 0x250   : > { %v1598_v14 = vmul.f32 %v2097_v59, %v2847_v20  ;;  %v1526_v28 = vpop.f32.mrb[1].mxu0 }
 0x251   : > { %v1596_v57 = vmul.f32 %v2847_v20, %v1526_v28  ;;  %v2098_v2 = vpop.f32.mrb[2].mxu0 }
 0x252   : > { %v1621_v60 = vadd.f32 %v2852_v46, %v1598_v14  ;;  %v1599_v18 = vmul.f32 %v2098_v2, %v2847_v20  ;;  %v1529_v37 = vpop.f32.mrb[3].mxu0 }
 0x253   : > { %v1619_v1 = vadd.f32 %v2852_v46, %v1596_v57  ;;  %v1597_v33 = vmul.f32 %v2847_v20, %v1529_v37 }
 0x254   : > { %v1637_v9 = vmax.f32 %v1621_v60, 0.0  ;;  %v1622_v51 = vadd.f32 %v2852_v46, %v1599_v18 }
 0x255   : > { %v1635_v36 = vmax.f32 %v1619_v1, 0.0  ;;  %v1620_v32 = vadd.f32 %v2852_v46, %v1597_v33 }
 0x256   : > { %v2058_v45 = vpack.c.bf16 %v1637_v9, %v1637_v9  ;;  %v1638_v11 = vmax.f32 %v1622_v51, 0.0 }
 0x257   : > { %v2056_v19 = vpack.c.bf16 %v1635_v36, %v1635_v36  ;;  %v1636_v61 = vmax.f32 %v1620_v32, 0.0  ;;  %v2101_v7 = vpop.f32.mrb[4].mxu0 }
 0x258   : > { %1718 = vst.msk [vmem:[%s2865_s30 + $0x8] sm:$0xf] %vm1715_vm0, %v2058_v45  ;;  %v2059_v62 = vpack.c.bf16 %v1638_v11, %v1638_v11  ;;  %v1602_v35 = vmul.f32 %v2101_v7, %v2847_v20  ;;  %v1542_v38 = vpop.f32.mrb[5].mxu0 }
 0x259   : > { %1716 = vst.msk [vmem:[%s2865_s30] sm:$0xf] %vm1715_vm0, %v2056_v19  ;;  %v2057_v23 = vpack.c.bf16 %v1636_v61, %v1636_v61  ;;  %v1600_v34 = vmul.f32 %v2847_v20, %v1542_v38  ;;  %v2102_v58 = vpop.f32.mrb[6].mxu0 }
 0x25a   : > { %1719 = vst.msk [vmem:[%s2865_s30 + $0xc] sm:$0xf] %vm1715_vm0, %v2059_v62  ;;  %v1625_v42 = vadd.f32 %v2852_v46, %v1602_v35  ;;  %v1603_v0 = vmul.f32 %v2102_v58, %v2847_v20  ;;  %v1545_v3 = vpop.f32.mrb[7].mxu0 }
 0x25b   : > { %1717 = vst.msk [vmem:[%s2865_s30 + $0x4] sm:$0xf] %vm1715_vm0, %v2057_v23  ;;  %v1623_v6 = vadd.f32 %v2852_v46, %v1600_v34  ;;  %v1601_v5 = vmul.f32 %v2847_v20, %v1545_v3  ;;  %v2109_v40 = vpop.f32.mrb[4].mxu1 }
 0x25c   : > { %v1641_v12 = vmax.f32 %v1625_v42, 0.0  ;;  %v1626_v63 = vadd.f32 %v2852_v46, %v1603_v0  ;;  %v1610_v39 = vmul.f32 %v2109_v40, %v2847_v20  ;;  %v1574_v21 = vpop.f32.mrb[5].mxu1 }
 0x25d   : > { %v1639_v41 = vmax.f32 %v1623_v6, 0.0  ;;  %v1624_v13 = vadd.f32 %v2852_v46, %v1601_v5  ;;  %v1608_v17 = vmul.f32 %v2847_v20, %v1574_v21  ;;  %v2110_v24 = vpop.f32.mrb[6].mxu1 }
 0x25e   : > { %v2062_v53 = vpack.c.bf16 %v1641_v12, %v1641_v12  ;;  %v1642_v27 = vmax.f32 %v1626_v63, 0.0  ;;  %v1633_v8 = vadd.f32 %v2852_v46, %v1610_v39  ;;  %v1611_v26 = vmul.f32 %v2110_v24, %v2847_v20  ;;  %v1577_v10 = vpop.f32.mrb[7].mxu1 }
 0x25f   : > { %v2060_v30 = vpack.c.bf16 %v1639_v41, %v1639_v41  ;;  %v1640_v22 = vmax.f32 %v1624_v13, 0.0  ;;  %v1631_v15 = vadd.f32 %v2852_v46, %v1608_v17  ;;  %v1609_v49 = vmul.f32 %v2847_v20, %v1577_v10 }
 0x260   : > { %1722 = vst.msk [vmem:[%s2865_s30 + $0x18] sm:$0xf] %vm1715_vm0, %v2062_v53  ;;  %v2063_v47 = vpack.c.bf16 %v1642_v27, %v1642_v27  ;;  %v1649_v50 = vmax.f32 %v1633_v8, 0.0  ;;  %v1634_v43 = vadd.f32 %v2852_v46, %v1611_v26 }
 0x261   : > { %1720 = vst.msk [vmem:[%s2865_s30 + $0x10] sm:$0xf] %vm1715_vm0, %v2060_v30  ;;  %v2061_v25 = vpack.c.bf16 %v1640_v22, %v1640_v22  ;;  %v1647_v16 = vmax.f32 %v1631_v15, 0.0  ;;  %v1632_v4 = vadd.f32 %v2852_v46, %v1609_v49 }
 0x262   : > { %1723 = vst.msk [vmem:[%s2865_s30 + $0x1c] sm:$0xf] %vm1715_vm0, %v2063_v47  ;;  %v2070_v31 = vpack.c.bf16 %v1649_v50, %v1649_v50  ;;  %v1650_v44 = vmax.f32 %v1634_v43, 0.0 }
 0x263   : > { %1721 = vst.msk [vmem:[%s2865_s30 + $0x14] sm:$0xf] %vm1715_vm0, %v2061_v25  ;;  %v2068_v52 = vpack.c.bf16 %v1647_v16, %v1647_v16  ;;  %v1648_v54 = vmax.f32 %v1632_v4, 0.0 }
 0x264   : > { %1730 = vst.msk [vmem:[%s2865_s30 + $0x38] sm:$0xf] %vm1715_vm0, %v2070_v31  ;;  %v2071_v20 = vpack.c.bf16 %v1650_v44, %v1650_v44 }
 0x265   : > { %1728 = vst.msk [vmem:[%s2865_s30 + $0x30] sm:$0xf] %vm1715_vm0, %v2068_v52  ;;  %v2069_v29 = vpack.c.bf16 %v1648_v54, %v1648_v54 }
 0x266   : > { %1731 = vst.msk [vmem:[%s2865_s30 + $0x3c] sm:$0xf] %vm1715_vm0, %v2071_v20 }
 0x267   : > { %1729 = vst.msk [vmem:[%s2865_s30 + $0x34] sm:$0xf] %vm1715_vm0, %v2069_v29 }
 0x268 PF: > { %s19_s13 = sadd.s32 1, %s2231_s13   ;;  %s2958_s22 = sld [smem:[#allocation2_spill]] }
 0x269   : > { %p16_p0 = scmp.ge.s32.totalorder %s19_s13, 6   ;;  %s2959_s16 = sld [smem:[#allocation3_spill]] }
 0x26a   : > { %s2960_s30 = smov %s2223_s11  ;;  %s2961_s10 = smov %s2227_s12 }
 0x26b   :  { %18 = sbr.rel (!%p16_p0) target bundleno = 4 (0x4), region = 101 }
 0x26e   : > { %s2962_s11 = smov %s2958_s22 }
 0x26f   : > { %s2963_s12 = smov %s2959_s16 }

</bundles_post_ra>
